<compile_context>
chip_gen: v7x
topology: tpu7x:2x2x1
jax: 0.10.0
libtpu: 0.0.40
codegen_flags: <defaults>
</compile_context>

<pallas_src>
import math
import functools

import jax
import jax.numpy as jnp
from jax import lax
from jax.experimental import pallas as pl
from jax.experimental.pallas import tpu as pltpu


# ----------------------------------------------------------------------------
# in-kernel helpers
# ----------------------------------------------------------------------------
def _layernorm(h, gamma, beta, eps=1e-5):
    h = h.astype(jnp.float32)
    mu = jnp.mean(h, axis=-1, keepdims=True)
    var = jnp.mean((h - mu) ** 2, axis=-1, keepdims=True)
    out = (h - mu) * lax.rsqrt(var + eps) * gamma
    if beta is not None:
        out = out + beta
    return out


def _nb(shape, dt):
    return math.prod(shape) * jnp.dtype(dt).itemsize


def _clamp_vmem(est):
    # 1.5x headroom for compiler-internal temporaries; floor 24 MiB; cap 56 MiB
    # so the request also fits v7x's 64 MiB physical VMEM with scratch headroom.
    return int(min(max(int(1.5 * est), 24 * 2 ** 20), 56 * 2 ** 20))


# ----------------------------------------------------------------------------
# attention kernel: grid = (B,)   (time-embed add + MHA + residual)
# ----------------------------------------------------------------------------
def _attn_kernel(tx_ref, x_ref, mask_ref, cos_ref, sin_ref,
                 g1_ref, b1_ref, wqkv_ref, gq_ref, gk_ref, wo_ref,
                 o_ref, *, n_heads, d_head, d_model, inv_scaling):
    # residual stream kept in f32 inside the kernel
    x = x_ref[0].astype(jnp.float32) + tx_ref[0].astype(jnp.float32)      # (L, D)
    # int8 {0,1} mask -> additive bias, built in-kernel (no f32 bias DMA)
    mbias = (mask_ref[0].astype(jnp.float32) - 1.0) * 1e30                # (L, L)

    h = _layernorm(x, g1_ref[...], b1_ref[...])
    qkv = jnp.dot(h.astype(jnp.bfloat16), wqkv_ref[...],
                  preferred_element_type=jnp.float32)                     # (L, 3D)
    q = _layernorm(qkv[:, 0 * d_model:1 * d_model], gq_ref[...], None)
    k = _layernorm(qkv[:, 1 * d_model:2 * d_model], gk_ref[...], None)
    v = qkv[:, 2 * d_model:3 * d_model]

    cos = cos_ref[...]                                                    # (L, d_head)
    sin = sin_ref[...]
    half = d_head // 2
    sm_scale = 1.0 / math.sqrt(d_head)

    def rope(z):  # rotary applied on the per-head (L, d_head) slab
        zr = jnp.concatenate([-z[:, half:], z[:, :half]], axis=-1)
        return z * cos + zr * sin

    # TODO(synk): at production n_heads (>=16) / L (>=1k) convert to
    # lax.fori_loop(..., unroll=2) with a flash-style KV loop so (L, L) score
    # temporaries never materialize; unnecessary at the demo shapes.
    ctx_parts = []
    for hh in range(n_heads):
        lo = hh * d_head
        qh = rope(q[:, lo:lo + d_head]) * sm_scale
        kh = rope(k[:, lo:lo + d_head])
        vh = v[:, lo:lo + d_head]
        s = lax.dot_general(qh.astype(jnp.bfloat16), kh.astype(jnp.bfloat16),
                            (((1,), (1,)), ((), ())),
                            preferred_element_type=jnp.float32)           # (L, L)
        s = s + mbias
        s = s - jnp.max(s, axis=-1, keepdims=True)
        # TODO(synk): on v6e/v7x do the exp in bf16 (EUP bf16 ~2x); keep f32 on v5e.
        p = jnp.exp(s)
        p = p * pl.reciprocal(jnp.sum(p, axis=-1, keepdims=True), approx=True)
        ctx_parts.append(jnp.dot(p.astype(jnp.bfloat16), vh.astype(jnp.bfloat16),
                                 preferred_element_type=jnp.float32))
    # assemble the full-width context in registers: no sub-128-lane VMEM stores
    # and no (L, D) f32 context scratch at all.
    ctx = jnp.concatenate(ctx_parts, axis=-1).astype(jnp.bfloat16)        # (L, D)
    r1 = jnp.dot(ctx, wo_ref[...], preferred_element_type=jnp.float32)
    o_ref[0] = (x + r1 * inv_scaling).astype(o_ref.dtype)


def _attn_vmem_limit(L, D, d_head):
    io = (_nb((1, 1, D), jnp.float32) + _nb((1, L, D), jnp.bfloat16)
          + _nb((1, L, L), jnp.int8) + 2 * _nb((L, d_head), jnp.float32)
          + 5 * _nb((1, D), jnp.float32)
          + _nb((D, 3 * D), jnp.bfloat16) + _nb((D, D), jnp.bfloat16)
          + _nb((1, L, D), jnp.bfloat16))                                 # output
    temps = 4 * (10 * L * D + 4 * L * L)          # qkv/q/k/v/x/h + live score tiles
    return _clamp_vmem(2 * io + temps)            # x2: double-buffered I/O blocks


def _run_attn(x, tx, mask_i8, cos, sin, p, *, n_heads, inv_scaling):
    B, L, D = x.shape
    d_head = D // n_heads
    kernel = functools.partial(_attn_kernel, n_heads=n_heads, d_head=d_head,
                               d_model=D, inv_scaling=inv_scaling)

    def rep(shape):                               # replicated across the grid
        nd = len(shape)
        return pl.BlockSpec(shape, lambda b, _nd=nd: (0,) * _nd)

    in_specs = [
        pl.BlockSpec((1, 1, D), lambda b: (b, 0, 0)),    # tx (time embedding)
        pl.BlockSpec((1, L, D), lambda b: (b, 0, 0)),    # x (bf16)
        pl.BlockSpec((1, L, L), lambda b: (b, 0, 0)),    # mask (int8)
        rep(cos.shape), rep(sin.shape),                  # (L, d_head) rotary tables
        rep(p["g1"].shape), rep(p["b1"].shape),
        rep(p["wqkv"].shape), rep(p["gq"].shape), rep(p["gk"].shape),
        rep(p["wo"].shape),
    ]
    out_specs = pl.BlockSpec((1, L, D), lambda b: (b, 0, 0))

    return pl.pallas_call(
        kernel,
        out_shape=jax.ShapeDtypeStruct((B, L, D), jnp.bfloat16),
        grid_spec=pltpu.PrefetchScalarGridSpec(
            num_scalar_prefetch=0, grid=(B,),
            in_specs=in_specs, out_specs=out_specs),
        compiler_params=pltpu.CompilerParams(
            dimension_semantics=("parallel",),
            vmem_limit_bytes=_attn_vmem_limit(L, D, d_head)),
    )(tx, x, mask_i8, cos, sin,
      p["g1"], p["b1"], p["wqkv"], p["gq"], p["gk"], p["wo"])


# ----------------------------------------------------------------------------
# SwiGLU FFN kernel: grid = (n_kt,) over the hidden dim, rows = all B*L tokens
# (weights streamed once per layer, independent of batch size)
# ----------------------------------------------------------------------------
def _ffn_kernel(x_ref, gf_ref, bf_ref, w1a_ref, w1b_ref, w2_ref,
                o_ref, h2_ref, acc_ref, *, inv_scaling):
    k = pl.program_id(0)

    @pl.when(k == 0)
    def _init():
        h2_ref[...] = _layernorm(x_ref[...], gf_ref[...], bf_ref[...]).astype(jnp.bfloat16)
        acc_ref[...] = jnp.zeros_like(acc_ref)

    h2 = h2_ref[...]                                                      # (N, D) bf16
    u1 = jnp.dot(h2, w1a_ref[...], preferred_element_type=jnp.float32)    # (N, th)
    u2 = jnp.dot(h2, w1b_ref[...], preferred_element_type=jnp.float32)    # (N, th)
    g = (u1 * jax.nn.sigmoid(u1)) * u2
    acc_ref[...] += jnp.dot(g.astype(jnp.bfloat16), w2_ref[...],
                            preferred_element_type=jnp.float32)           # (N, D)

    # single gated output write at the last hidden tile (review item #1)
    @pl.when(k == pl.num_programs(0) - 1)
    def _finalize():
        o_ref[...] = (x_ref[...].astype(jnp.float32)
                      + acc_ref[...] * inv_scaling).astype(o_ref.dtype)


def _ffn_vmem_limit(N, D, th):
    io = (_nb((N, D), jnp.bfloat16) * 2                 # xres in, out
          + 2 * _nb((1, D), jnp.float32)                # gf, bf
          + 2 * _nb((D, th), jnp.bfloat16)              # w1a, w1b tiles
          + _nb((th, D), jnp.bfloat16))                 # w2 tile
    scratch = _nb((N, D), jnp.bfloat16) + _nb((N, D), jnp.float32)
    temps = 4 * 3 * N * th                              # u1, u2, g (f32)
    return _clamp_vmem(2 * io + scratch + temps)


def _run_ffn(xres, p, *, inv_scaling):
    B, L, D = xres.shape
    N = B * L
    x2 = xres.reshape(N, D)                             # position-wise op: fold batch
    d_hidden = p["w2"].shape[0]
    # 256-wide hidden tile for v6e/v7x 256x256 MXU fill (still a 128 multiple on v5e)
    th = 256 if d_hidden % 256 == 0 else (128 if d_hidden % 128 == 0 else d_hidden)
    n_kt = d_hidden // th

    kernel = functools.partial(_ffn_kernel, inv_scaling=inv_scaling)
    in_specs = [
        pl.BlockSpec((N, D), lambda k: (0, 0)),          # xres: resident (DMA'd once)
        pl.BlockSpec(p["gf"].shape, lambda k: (0, 0)),
        pl.BlockSpec(p["bf"].shape, lambda k: (0, 0)),
        pl.BlockSpec((D, th), lambda k: (0, k)),         # w1a tile (gate)
        pl.BlockSpec((D, th), lambda k: (0, k)),         # w1b tile (value)
        pl.BlockSpec((th, D), lambda k: (k, 0)),         # w2 tile
    ]
    out_specs = pl.BlockSpec((N, D), lambda k: (0, 0))

    out = pl.pallas_call(
        kernel,
        out_shape=jax.ShapeDtypeStruct((N, D), jnp.bfloat16),
        grid_spec=pltpu.PrefetchScalarGridSpec(
            num_scalar_prefetch=0, grid=(n_kt,),
            in_specs=in_specs, out_specs=out_specs,
            scratch_shapes=[pltpu.VMEM((N, D), jnp.bfloat16),   # FFN LN output
                            pltpu.VMEM((N, D), jnp.float32)]),  # accumulator
        compiler_params=pltpu.CompilerParams(
            dimension_semantics=("arbitrary",),
            vmem_limit_bytes=_ffn_vmem_limit(N, D, th)),
    )(x2, p["gf"], p["bf"], p["w1a"], p["w1b"], p["w2"])
    return out.reshape(B, L, D)


# ----------------------------------------------------------------------------
# final LayerNorm (bias=False) of the stack
# ----------------------------------------------------------------------------
def _final_ln_kernel(x_ref, g_ref, o_ref):
    o_ref[0] = _layernorm(x_ref[0], g_ref[...], None)


def _run_final_ln(x, gamma):
    B, L, D = x.shape
    return pl.pallas_call(
        _final_ln_kernel,
        out_shape=jax.ShapeDtypeStruct((B, L, D), jnp.float32),
        grid=(B,),
        in_specs=[pl.BlockSpec((1, L, D), lambda b: (b, 0, 0)),
                  pl.BlockSpec((1, D), lambda b: (0, 0))],
        out_specs=pl.BlockSpec((1, L, D), lambda b: (b, 0, 0)),
        compiler_params=pltpu.CompilerParams(dimension_semantics=("parallel",)),
    )(x, gamma)


# ----------------------------------------------------------------------------
# parameter init (deterministic, synthetic).  Matmul weights in bf16.
# ----------------------------------------------------------------------------
def init_params(key, *, d_model, d_time, n_heads, n_layers, expansion_ratio=8 / 3):
    d_hidden = int(((expansion_ratio * d_model) + 255) // 256 * 256)
    layers = []
    for i in range(n_layers):
        keys = jax.random.split(jax.random.fold_in(key, i), 12)

        def w(k, shape, scale=0.02):
            return (scale * jax.random.normal(k, shape)).astype(jnp.float32)

        p = dict(
            wt=w(keys[0], (d_time, d_model)),                        # f32 (wrapper GEMV)
            bt=w(keys[1], (1, d_model), 0.05),
            g1=1.0 + w(keys[2], (1, d_model), 0.1),
            b1=w(keys[3], (1, d_model), 0.05),
            wqkv=w(keys[4], (d_model, 3 * d_model)).astype(jnp.bfloat16),
            gq=1.0 + w(keys[5], (1, d_model), 0.1),
            gk=1.0 + w(keys[6], (1, d_model), 0.1),
            wo=w(keys[7], (d_model, d_model)).astype(jnp.bfloat16),
            gf=1.0 + w(keys[8], (1, d_model), 0.1),
            bf=jnp.zeros((1, d_model), jnp.float32),
            w1a=w(keys[9], (d_model, d_hidden)).astype(jnp.bfloat16),
            w1b=w(keys[10], (d_model, d_hidden)).astype(jnp.bfloat16),
            w2=w(keys[11], (d_hidden, d_model)).astype(jnp.bfloat16),
        )
        layers.append(p)
    final_gamma = 1.0 + 0.1 * jax.random.normal(jax.random.fold_in(key, 999),
                                                (1, d_model)).astype(jnp.float32)
    return layers, final_gamma


# ----------------------------------------------------------------------------
# full stack forward (Pallas)
# ----------------------------------------------------------------------------
def coflow_stack_forward(x, t, attn_mask, layers, final_gamma, *,
                         d_time, n_heads, n_layers, scale_residue=True,
                         max_positions=2000):
    B, L, D = x.shape
    d_head = D // n_heads
    scaling = math.sqrt(n_layers / 36.0) if scale_residue else 1.0
    inv_scaling = 1.0 / scaling

    # Fourier features + time-embedding projection (tiny GEMV) hoisted out of kernel
    half = d_time // 2
    emb = jnp.exp(jnp.arange(half, dtype=jnp.float32)
                  * -(math.log(max_positions) / (half - 1)))
    ht = t.astype(jnp.float32) @ emb[None, :]                       # (B, half)
    feat = jnp.concatenate([jnp.cos(ht), jnp.sin(ht)], axis=-1)     # (B, d_time)

    # rotary tables (non-interleaved, base 10000): (L, d_head), shared by all heads
    inv_freq = 1.0 / (10000.0 ** (jnp.arange(0, d_head, 2, dtype=jnp.float32) / d_head))
    pos = jnp.arange(L, dtype=jnp.float32)
    fr = pos[:, None] * inv_freq[None, :]                           # (L, d_head//2)
    cos = jnp.concatenate([jnp.cos(fr), jnp.cos(fr)], axis=-1)      # (L, d_head)
    sin = jnp.concatenate([jnp.sin(fr), jnp.sin(fr)], axis=-1)

    # bool mask shipped as int8 {0,1}; additive bias built in-kernel
    # TODO(synk): for structured (causal/padding) masks, build the bias from
    # broadcasted_iota + per-row lengths via scalar prefetch and drop this input.
    mask_i8 = attn_mask.astype(jnp.int8)

    # NOTE: bf16 inter-layer residual stream (documented drift vs f32 reference)
    x = x.astype(jnp.bfloat16)
    for p in layers:
        tx = (feat @ p["wt"] + p["bt"]).reshape(B, 1, D)            # (B, 1, D) f32
        xres = _run_attn(x, tx, mask_i8, cos, sin, p,
                         n_heads=n_heads, inv_scaling=inv_scaling)
        x = _run_ffn(xres, p, inv_scaling=inv_scaling)
    return _run_final_ln(x, final_gamma), x


# ----------------------------------------------------------------------------
# pure-JAX f32 reference (mirrors the PyTorch module semantics) for verification
# ----------------------------------------------------------------------------
def reference_forward(x, t, attn_mask, layers, final_gamma, *,
                      d_time, n_heads, n_layers, scale_residue=True,
                      max_positions=2000):
    x = x.astype(jnp.float32)
    B, L, D = x.shape
    d_head = D // n_heads
    scaling = math.sqrt(n_layers / 36.0) if scale_residue else 1.0
    half = d_time // 2
    emb = jnp.exp(jnp.arange(half, dtype=jnp.float32)
                  * -(math.log(max_positions) / (half - 1)))
    h = t.astype(jnp.float32) @ emb[None, :]
    feat = jnp.concatenate([jnp.cos(h), jnp.sin(h)], axis=-1)

    inv_freq = 1.0 / (10000.0 ** (jnp.arange(0, d_head, 2, dtype=jnp.float32) / d_head))
    pos = jnp.arange(L, dtype=jnp.float32)
    fr = pos[:, None] * inv_freq[None, :]
    cos = jnp.concatenate([jnp.cos(fr), jnp.cos(fr)], axis=-1)
    sin = jnp.concatenate([jnp.sin(fr), jnp.sin(fr)], axis=-1)
    mbias = jnp.where(attn_mask, 0.0, -1e30).astype(jnp.float32)

    def ln(h_, g, b=None, eps=1e-5):
        mu = h_.mean(-1, keepdims=True)
        var = ((h_ - mu) ** 2).mean(-1, keepdims=True)
        o = (h_ - mu) / jnp.sqrt(var + eps) * g
        return o + b if b is not None else o

    def rot_half(z):
        z1, z2 = z[..., :d_head // 2], z[..., d_head // 2:]
        return jnp.concatenate([-z2, z1], axis=-1)

    def f32(a):
        return a.astype(jnp.float32)

    for p in layers:
        tx = feat @ p["wt"] + p["bt"]
        x = x + tx[:, None, :]
        hh = ln(x, p["g1"], p["b1"])
        qkv = hh @ f32(p["wqkv"])
        q, k, v = jnp.split(qkv, 3, axis=-1)
        q = ln(q, p["gq"])
        k = ln(k, p["gk"])
        q = q.reshape(B, L, n_heads, d_head)
        k = k.reshape(B, L, n_heads, d_head)
        v = v.reshape(B, L, n_heads, d_head)
        q = q * cos[None, :, None, :] + rot_half(q) * sin[None, :, None, :]
        k = k * cos[None, :, None, :] + rot_half(k) * sin[None, :, None, :]
        q, k, v = (z.transpose(0, 2, 1, 3) for z in (q, k, v))
        s = jnp.einsum("bhqd,bhkd->bhqk", q, k) / math.sqrt(d_head) + mbias[:, None]
        a = jax.nn.softmax(s, axis=-1)
        ctx = jnp.einsum("bhqk,bhkd->bhqd", a, v).transpose(0, 2, 1, 3).reshape(B, L, D)
        x = x + (ctx @ f32(p["wo"])) / scaling
        h2 = ln(x, p["gf"], p["bf"])
        u1 = h2 @ f32(p["w1a"])
        u2 = h2 @ f32(p["w1b"])
        g = jax.nn.silu(u1) * u2
        x = x + (g @ f32(p["w2"])) / scaling
    return ln(x, final_gamma), x


# ----------------------------------------------------------------------------
if __name__ == "__main__":
    B, L, D = 2, 8, 32
    d_time, n_heads, n_layers = 8, 4, 2

    key = jax.random.PRNGKey(0)
    kx, kt, kp = jax.random.split(key, 3)
    x = jax.random.normal(kx, (B, L, D), jnp.float32)
    t = jax.random.uniform(kt, (B, 1), jnp.float32)           # diffusion time
    attn_mask = jnp.tril(jnp.ones((L, L), dtype=bool))[None].repeat(B, axis=0)

    layers, final_gamma = init_params(kp, d_model=D, d_time=d_time,
                                      n_heads=n_heads, n_layers=n_layers)

    y_norm, y_raw = coflow_stack_forward(
        x, t, attn_mask, layers, final_gamma,
        d_time=d_time, n_heads=n_heads, n_layers=n_layers)
    jax.block_until_ready((y_norm, y_raw))

    r_norm, r_raw = reference_forward(
        x, t, attn_mask, layers, final_gamma,
        d_time=d_time, n_heads=n_heads, n_layers=n_layers)

    # bf16 activations/weights + approx reciprocal -> looser tolerance than f32
    y_raw_f32 = y_raw.astype(jnp.float32)
    assert jnp.allclose(y_raw_f32, r_raw, atol=5e-2, rtol=5e-2), \
        float(jnp.max(jnp.abs(y_raw_f32 - r_raw)))
    assert jnp.allclose(y_norm, r_norm, atol=5e-2, rtol=5e-2), \
        float(jnp.max(jnp.abs(y_norm - r_norm)))

    print("KERNEL_OK")
</pallas_src>

<mosaic_0001>
module attributes {stable_mosaic.version = 11 : i64} {
  func.func @_attn_kernel(%arg0: i32, %arg1: memref<1x1x32xf32, #tpu.memory_space<vmem>>, %arg2: memref<1x8x32xbf16, #tpu.memory_space<vmem>>, %arg3: memref<1x8x8xi8, #tpu.memory_space<vmem>>, %arg4: memref<8x8xf32, #tpu.memory_space<vmem>>, %arg5: memref<8x8xf32, #tpu.memory_space<vmem>>, %arg6: memref<1x32xf32, #tpu.memory_space<vmem>>, %arg7: memref<1x32xf32, #tpu.memory_space<vmem>>, %arg8: memref<32x96xbf16, #tpu.memory_space<vmem>>, %arg9: memref<1x32xf32, #tpu.memory_space<vmem>>, %arg10: memref<1x32xf32, #tpu.memory_space<vmem>>, %arg11: memref<32x32xbf16, #tpu.memory_space<vmem>>, %arg12: memref<1x8x32xbf16, #tpu.memory_space<vmem>>) attributes {dimension_semantics = [#tpu.dimension_semantics<parallel>], iteration_bounds = array<i64: 2>, scalar_prefetch = 0 : i64, scratch_operands = 0 : i64, tpu.core_type = #tpu.core_type<tc>, window_params = [{transform_indices = @transform_0, window_bounds = array<i64: 1, 1, 32>}, {transform_indices = @transform_1, window_bounds = array<i64: 1, 8, 32>}, {transform_indices = @transform_2, window_bounds = array<i64: 1, 8, 8>}, {pipeline_mode = #tpu.pipeline_mode<synchronous>, transform_indices = @transform_3, window_bounds = array<i64: 8, 8>}, {pipeline_mode = #tpu.pipeline_mode<synchronous>, transform_indices = @transform_4, window_bounds = array<i64: 8, 8>}, {pipeline_mode = #tpu.pipeline_mode<synchronous>, transform_indices = @transform_5, window_bounds = array<i64: 1, 32>}, {pipeline_mode = #tpu.pipeline_mode<synchronous>, transform_indices = @transform_6, window_bounds = array<i64: 1, 32>}, {pipeline_mode = #tpu.pipeline_mode<synchronous>, transform_indices = @transform_7, window_bounds = array<i64: 32, 96>}, {pipeline_mode = #tpu.pipeline_mode<synchronous>, transform_indices = @transform_8, window_bounds = array<i64: 1, 32>}, {pipeline_mode = #tpu.pipeline_mode<synchronous>, transform_indices = @transform_9, window_bounds = array<i64: 1, 32>}, {pipeline_mode = #tpu.pipeline_mode<synchronous>, transform_indices = @transform_10, window_bounds = array<i64: 32, 32>}, {transform_indices = @transform_11, window_bounds = array<i64: 1, 8, 32>}]} {
    %c0 = arith.constant 0 : index
    %c0_0 = arith.constant 0 : index
    %c0_1 = arith.constant 0 : index
    %0 = vector.load %arg2[%c0, %c0_0, %c0_1] : memref<1x8x32xbf16, #tpu.memory_space<vmem>>, vector<1x8x32xbf16>
    %1 = vector.shape_cast %0 : vector<1x8x32xbf16> to vector<8x32xbf16>
    %2 = arith.extf %1 : vector<8x32xbf16> to vector<8x32xf32>
    %c0_2 = arith.constant 0 : index
    %c0_3 = arith.constant 0 : index
    %c0_4 = arith.constant 0 : index
    %3 = vector.load %arg1[%c0_2, %c0_3, %c0_4] : memref<1x1x32xf32, #tpu.memory_space<vmem>>, vector<1x1x32xf32>
    %4 = vector.shape_cast %3 : vector<1x1x32xf32> to vector<1x32xf32>
    %5 = vector.broadcast %4 : vector<1x32xf32> to vector<8x32xf32>
    %6 = arith.addf %2, %5 : vector<8x32xf32>
    %c0_5 = arith.constant 0 : index
    %c0_6 = arith.constant 0 : index
    %c0_7 = arith.constant 0 : index
    %7 = vector.load %arg3[%c0_5, %c0_6, %c0_7] : memref<1x8x8xi8, #tpu.memory_space<vmem>>, vector<1x8x8xi8>
    %8 = vector.shape_cast %7 : vector<1x8x8xi8> to vector<8x8xi8>
    %9 = arith.sitofp %8 : vector<8x8xi8> to vector<8x8xf32>
    %cst = arith.constant 1.000000e+00 : f32
    %10 = vector.broadcast %cst : f32 to vector<8x8xf32>
    %11 = arith.subf %9, %10 : vector<8x8xf32>
    %cst_8 = arith.constant 1.000000e+30 : f32
    %12 = vector.broadcast %cst_8 : f32 to vector<8x8xf32>
    %13 = arith.mulf %11, %12 : vector<8x8xf32>
    %c0_9 = arith.constant 0 : index
    %c0_10 = arith.constant 0 : index
    %14 = vector.load %arg6[%c0_9, %c0_10] : memref<1x32xf32, #tpu.memory_space<vmem>>, vector<1x32xf32>
    %c0_11 = arith.constant 0 : index
    %c0_12 = arith.constant 0 : index
    %15 = vector.load %arg7[%c0_11, %c0_12] : memref<1x32xf32, #tpu.memory_space<vmem>>, vector<1x32xf32>
    %cst_13 = arith.constant dense<0.000000e+00> : vector<8xf32>
    %16 = vector.multi_reduction <add>, %6, %cst_13 [1] : vector<8x32xf32> to vector<8xf32>
    %17 = vector.shape_cast %16 : vector<8xf32> to vector<8x1xf32>
    %cst_14 = arith.constant 3.200000e+01 : f32
    %18 = vector.broadcast %cst_14 : f32 to vector<8x1xf32>
    %19 = arith.divf %17, %18 : vector<8x1xf32>
    %20 = vector.broadcast %19 : vector<8x1xf32> to vector<8x32xf32>
    %21 = arith.subf %6, %20 : vector<8x32xf32>
    %22 = arith.mulf %21, %21 : vector<8x32xf32>
    %cst_15 = arith.constant dense<0.000000e+00> : vector<8xf32>
    %23 = vector.multi_reduction <add>, %22, %cst_15 [1] : vector<8x32xf32> to vector<8xf32>
    %24 = vector.shape_cast %23 : vector<8xf32> to vector<8x1xf32>
    %cst_16 = arith.constant 3.200000e+01 : f32
    %25 = vector.broadcast %cst_16 : f32 to vector<8x1xf32>
    %26 = arith.divf %24, %25 : vector<8x1xf32>
    %27 = vector.broadcast %19 : vector<8x1xf32> to vector<8x32xf32>
    %28 = arith.subf %6, %27 : vector<8x32xf32>
    %cst_17 = arith.constant 9.99999974E-6 : f32
    %29 = vector.broadcast %cst_17 : f32 to vector<8x1xf32>
    %30 = arith.addf %26, %29 : vector<8x1xf32>
    %31 = math.rsqrt %30 : vector<8x1xf32>
    %32 = vector.broadcast %31 : vector<8x1xf32> to vector<8x32xf32>
    %33 = arith.mulf %28, %32 : vector<8x32xf32>
    %34 = vector.broadcast %14 : vector<1x32xf32> to vector<8x32xf32>
    %35 = arith.mulf %33, %34 : vector<8x32xf32>
    %36 = vector.broadcast %15 : vector<1x32xf32> to vector<8x32xf32>
    %37 = arith.addf %35, %36 : vector<8x32xf32>
    %38 = arith.truncf %37 : vector<8x32xf32> to vector<8x32xbf16>
    %c0_18 = arith.constant 0 : index
    %c0_19 = arith.constant 0 : index
    %39 = vector.load %arg8[%c0_18, %c0_19] : memref<32x96xbf16, #tpu.memory_space<vmem>>, vector<32x96xbf16>
    %cst_20 = arith.constant dense<0.000000e+00> : vector<8x96xf32>
    %40 = tpu.matmul %38, %39, %cst_20 {dimension_numbers = #tpu.dot_dimension_numbers<[1], [0], [0], [1], [0, 0, 1, 1], [], []>} : vector<8x32xbf16>, vector<32x96xbf16>, vector<8x96xf32> -> vector<8x96xf32>
    %41 = vector.extract_strided_slice %40 {offsets = [0, 0], sizes = [8, 32], strides = [1, 1]} : vector<8x96xf32> to vector<8x32xf32>
    %c0_21 = arith.constant 0 : index
    %c0_22 = arith.constant 0 : index
    %42 = vector.load %arg9[%c0_21, %c0_22] : memref<1x32xf32, #tpu.memory_space<vmem>>, vector<1x32xf32>
    %cst_23 = arith.constant dense<0.000000e+00> : vector<8xf32>
    %43 = vector.multi_reduction <add>, %41, %cst_23 [1] : vector<8x32xf32> to vector<8xf32>
    %44 = vector.shape_cast %43 : vector<8xf32> to vector<8x1xf32>
    %cst_24 = arith.constant 3.200000e+01 : f32
    %45 = vector.broadcast %cst_24 : f32 to vector<8x1xf32>
    %46 = arith.divf %44, %45 : vector<8x1xf32>
    %47 = vector.broadcast %46 : vector<8x1xf32> to vector<8x32xf32>
    %48 = arith.subf %41, %47 : vector<8x32xf32>
    %49 = arith.mulf %48, %48 : vector<8x32xf32>
    %cst_25 = arith.constant dense<0.000000e+00> : vector<8xf32>
    %50 = vector.multi_reduction <add>, %49, %cst_25 [1] : vector<8x32xf32> to vector<8xf32>
    %51 = vector.shape_cast %50 : vector<8xf32> to vector<8x1xf32>
    %cst_26 = arith.constant 3.200000e+01 : f32
    %52 = vector.broadcast %cst_26 : f32 to vector<8x1xf32>
    %53 = arith.divf %51, %52 : vector<8x1xf32>
    %54 = vector.broadcast %46 : vector<8x1xf32> to vector<8x32xf32>
    %55 = arith.subf %41, %54 : vector<8x32xf32>
    %cst_27 = arith.constant 9.99999974E-6 : f32
    %56 = vector.broadcast %cst_27 : f32 to vector<8x1xf32>
    %57 = arith.addf %53, %56 : vector<8x1xf32>
    %58 = math.rsqrt %57 : vector<8x1xf32>
    %59 = vector.broadcast %58 : vector<8x1xf32> to vector<8x32xf32>
    %60 = arith.mulf %55, %59 : vector<8x32xf32>
    %61 = vector.broadcast %42 : vector<1x32xf32> to vector<8x32xf32>
    %62 = arith.mulf %60, %61 : vector<8x32xf32>
    %63 = vector.extract_strided_slice %40 {offsets = [0, 32], sizes = [8, 32], strides = [1, 1]} : vector<8x96xf32> to vector<8x32xf32>
    %c0_28 = arith.constant 0 : index
    %c0_29 = arith.constant 0 : index
    %64 = vector.load %arg10[%c0_28, %c0_29] : memref<1x32xf32, #tpu.memory_space<vmem>>, vector<1x32xf32>
    %cst_30 = arith.constant dense<0.000000e+00> : vector<8xf32>
    %65 = vector.multi_reduction <add>, %63, %cst_30 [1] : vector<8x32xf32> to vector<8xf32>
    %66 = vector.shape_cast %65 : vector<8xf32> to vector<8x1xf32>
    %cst_31 = arith.constant 3.200000e+01 : f32
    %67 = vector.broadcast %cst_31 : f32 to vector<8x1xf32>
    %68 = arith.divf %66, %67 : vector<8x1xf32>
    %69 = vector.broadcast %68 : vector<8x1xf32> to vector<8x32xf32>
    %70 = arith.subf %63, %69 : vector<8x32xf32>
    %71 = arith.mulf %70, %70 : vector<8x32xf32>
    %cst_32 = arith.constant dense<0.000000e+00> : vector<8xf32>
    %72 = vector.multi_reduction <add>, %71, %cst_32 [1] : vector<8x32xf32> to vector<8xf32>
    %73 = vector.shape_cast %72 : vector<8xf32> to vector<8x1xf32>
    %cst_33 = arith.constant 3.200000e+01 : f32
    %74 = vector.broadcast %cst_33 : f32 to vector<8x1xf32>
    %75 = arith.divf %73, %74 : vector<8x1xf32>
    %76 = vector.broadcast %68 : vector<8x1xf32> to vector<8x32xf32>
    %77 = arith.subf %63, %76 : vector<8x32xf32>
    %cst_34 = arith.constant 9.99999974E-6 : f32
    %78 = vector.broadcast %cst_34 : f32 to vector<8x1xf32>
    %79 = arith.addf %75, %78 : vector<8x1xf32>
    %80 = math.rsqrt %79 : vector<8x1xf32>
    %81 = vector.broadcast %80 : vector<8x1xf32> to vector<8x32xf32>
    %82 = arith.mulf %77, %81 : vector<8x32xf32>
    %83 = vector.broadcast %64 : vector<1x32xf32> to vector<8x32xf32>
    %84 = arith.mulf %82, %83 : vector<8x32xf32>
    %85 = vector.extract_strided_slice %40 {offsets = [0, 64], sizes = [8, 32], strides = [1, 1]} : vector<8x96xf32> to vector<8x32xf32>
    %c0_35 = arith.constant 0 : index
    %c0_36 = arith.constant 0 : index
    %86 = vector.load %arg4[%c0_35, %c0_36] : memref<8x8xf32, #tpu.memory_space<vmem>>, vector<8x8xf32>
    %c0_37 = arith.constant 0 : index
    %c0_38 = arith.constant 0 : index
    %87 = vector.load %arg5[%c0_37, %c0_38] : memref<8x8xf32, #tpu.memory_space<vmem>>, vector<8x8xf32>
    %88 = vector.extract_strided_slice %62 {offsets = [0, 0], sizes = [8, 8], strides = [1, 1]} : vector<8x32xf32> to vector<8x8xf32>
    %89 = vector.extract_strided_slice %88 {offsets = [0, 4], sizes = [8, 4], strides = [1, 1]} : vector<8x8xf32> to vector<8x4xf32>
    %cst_39 = arith.constant 0.000000e+00 : f32
    %90 = vector.broadcast %cst_39 : f32 to vector<8x4xf32>
    %91 = arith.subf %90, %89 : vector<8x4xf32>
    %92 = vector.extract_strided_slice %88 {offsets = [0, 0], sizes = [8, 4], strides = [1, 1]} : vector<8x8xf32> to vector<8x4xf32>
    %93 = tpu.concatenate %91, %92 in 1 : vector<8x4xf32>, vector<8x4xf32> -> vector<8x8xf32>
    %94 = arith.mulf %88, %86 : vector<8x8xf32>
    %95 = arith.mulf %93, %87 : vector<8x8xf32>
    %96 = arith.addf %94, %95 : vector<8x8xf32>
    %cst_40 = arith.constant 0.353553385 : f32
    %97 = vector.broadcast %cst_40 : f32 to vector<8x8xf32>
    %98 = arith.mulf %96, %97 : vector<8x8xf32>
    %99 = vector.extract_strided_slice %84 {offsets = [0, 0], sizes = [8, 8], strides = [1, 1]} : vector<8x32xf32> to vector<8x8xf32>
    %100 = vector.extract_strided_slice %99 {offsets = [0, 4], sizes = [8, 4], strides = [1, 1]} : vector<8x8xf32> to vector<8x4xf32>
    %cst_41 = arith.constant 0.000000e+00 : f32
    %101 = vector.broadcast %cst_41 : f32 to vector<8x4xf32>
    %102 = arith.subf %101, %100 : vector<8x4xf32>
    %103 = vector.extract_strided_slice %99 {offsets = [0, 0], sizes = [8, 4], strides = [1, 1]} : vector<8x8xf32> to vector<8x4xf32>
    %104 = tpu.concatenate %102, %103 in 1 : vector<8x4xf32>, vector<8x4xf32> -> vector<8x8xf32>
    %105 = arith.mulf %99, %86 : vector<8x8xf32>
    %106 = arith.mulf %104, %87 : vector<8x8xf32>
    %107 = arith.addf %105, %106 : vector<8x8xf32>
    %108 = vector.extract_strided_slice %85 {offsets = [0, 0], sizes = [8, 8], strides = [1, 1]} : vector<8x32xf32> to vector<8x8xf32>
    %109 = arith.truncf %98 : vector<8x8xf32> to vector<8x8xbf16>
    %110 = arith.truncf %107 : vector<8x8xf32> to vector<8x8xbf16>
    %cst_42 = arith.constant dense<0.000000e+00> : vector<8x8xf32>
    %111 = tpu.matmul %109, %110, %cst_42 {dimension_numbers = #tpu.dot_dimension_numbers<[1], [1], [0], [0], [0, 0, 1, 0], [], []>} : vector<8x8xbf16>, vector<8x8xbf16>, vector<8x8xf32> -> vector<8x8xf32>
    %112 = arith.addf %111, %13 : vector<8x8xf32>
    %cst_43 = arith.constant dense<0xFF800000> : vector<8xf32>
    %113 = vector.multi_reduction <maximumf>, %112, %cst_43 [1] : vector<8x8xf32> to vector<8xf32>
    %114 = vector.shape_cast %113 : vector<8xf32> to vector<8x1xf32>
    %115 = vector.broadcast %114 : vector<8x1xf32> to vector<8x8xf32>
    %116 = arith.subf %112, %115 : vector<8x8xf32>
    %117 = math.exp %116 : vector<8x8xf32>
    %cst_44 = arith.constant dense<0.000000e+00> : vector<8xf32>
    %118 = vector.multi_reduction <add>, %117, %cst_44 [1] : vector<8x8xf32> to vector<8xf32>
    %119 = vector.shape_cast %118 : vector<8xf32> to vector<8x1xf32>
    %120 = tpu.reciprocal %119 {approx = true} : vector<8x1xf32> -> vector<8x1xf32>
    %121 = vector.broadcast %120 : vector<8x1xf32> to vector<8x8xf32>
    %122 = arith.mulf %117, %121 : vector<8x8xf32>
    %123 = arith.truncf %122 : vector<8x8xf32> to vector<8x8xbf16>
    %124 = arith.truncf %108 : vector<8x8xf32> to vector<8x8xbf16>
    %cst_45 = arith.constant dense<0.000000e+00> : vector<8x8xf32>
    %125 = tpu.matmul %123, %124, %cst_45 {dimension_numbers = #tpu.dot_dimension_numbers<[1], [0], [0], [1], [0, 0, 1, 1], [], []>} : vector<8x8xbf16>, vector<8x8xbf16>, vector<8x8xf32> -> vector<8x8xf32>
    %126 = vector.extract_strided_slice %62 {offsets = [0, 8], sizes = [8, 8], strides = [1, 1]} : vector<8x32xf32> to vector<8x8xf32>
    %127 = vector.extract_strided_slice %126 {offsets = [0, 4], sizes = [8, 4], strides = [1, 1]} : vector<8x8xf32> to vector<8x4xf32>
    %cst_46 = arith.constant 0.000000e+00 : f32
    %128 = vector.broadcast %cst_46 : f32 to vector<8x4xf32>
    %129 = arith.subf %128, %127 : vector<8x4xf32>
    %130 = vector.extract_strided_slice %126 {offsets = [0, 0], sizes = [8, 4], strides = [1, 1]} : vector<8x8xf32> to vector<8x4xf32>
    %131 = tpu.concatenate %129, %130 in 1 : vector<8x4xf32>, vector<8x4xf32> -> vector<8x8xf32>
    %132 = arith.mulf %126, %86 : vector<8x8xf32>
    %133 = arith.mulf %131, %87 : vector<8x8xf32>
    %134 = arith.addf %132, %133 : vector<8x8xf32>
    %cst_47 = arith.constant 0.353553385 : f32
    %135 = vector.broadcast %cst_47 : f32 to vector<8x8xf32>
    %136 = arith.mulf %134, %135 : vector<8x8xf32>
    %137 = vector.extract_strided_slice %84 {offsets = [0, 8], sizes = [8, 8], strides = [1, 1]} : vector<8x32xf32> to vector<8x8xf32>
    %138 = vector.extract_strided_slice %137 {offsets = [0, 4], sizes = [8, 4], strides = [1, 1]} : vector<8x8xf32> to vector<8x4xf32>
    %cst_48 = arith.constant 0.000000e+00 : f32
    %139 = vector.broadcast %cst_48 : f32 to vector<8x4xf32>
    %140 = arith.subf %139, %138 : vector<8x4xf32>
    %141 = vector.extract_strided_slice %137 {offsets = [0, 0], sizes = [8, 4], strides = [1, 1]} : vector<8x8xf32> to vector<8x4xf32>
    %142 = tpu.concatenate %140, %141 in 1 : vector<8x4xf32>, vector<8x4xf32> -> vector<8x8xf32>
    %143 = arith.mulf %137, %86 : vector<8x8xf32>
    %144 = arith.mulf %142, %87 : vector<8x8xf32>
    %145 = arith.addf %143, %144 : vector<8x8xf32>
    %146 = vector.extract_strided_slice %85 {offsets = [0, 8], sizes = [8, 8], strides = [1, 1]} : vector<8x32xf32> to vector<8x8xf32>
    %147 = arith.truncf %136 : vector<8x8xf32> to vector<8x8xbf16>
    %148 = arith.truncf %145 : vector<8x8xf32> to vector<8x8xbf16>
    %cst_49 = arith.constant dense<0.000000e+00> : vector<8x8xf32>
    %149 = tpu.matmul %147, %148, %cst_49 {dimension_numbers = #tpu.dot_dimension_numbers<[1], [1], [0], [0], [0, 0, 1, 0], [], []>} : vector<8x8xbf16>, vector<8x8xbf16>, vector<8x8xf32> -> vector<8x8xf32>
    %150 = arith.addf %149, %13 : vector<8x8xf32>
    %cst_50 = arith.constant dense<0xFF800000> : vector<8xf32>
    %151 = vector.multi_reduction <maximumf>, %150, %cst_50 [1] : vector<8x8xf32> to vector<8xf32>
    %152 = vector.shape_cast %151 : vector<8xf32> to vector<8x1xf32>
    %153 = vector.broadcast %152 : vector<8x1xf32> to vector<8x8xf32>
    %154 = arith.subf %150, %153 : vector<8x8xf32>
    %155 = math.exp %154 : vector<8x8xf32>
    %cst_51 = arith.constant dense<0.000000e+00> : vector<8xf32>
    %156 = vector.multi_reduction <add>, %155, %cst_51 [1] : vector<8x8xf32> to vector<8xf32>
    %157 = vector.shape_cast %156 : vector<8xf32> to vector<8x1xf32>
    %158 = tpu.reciprocal %157 {approx = true} : vector<8x1xf32> -> vector<8x1xf32>
    %159 = vector.broadcast %158 : vector<8x1xf32> to vector<8x8xf32>
    %160 = arith.mulf %155, %159 : vector<8x8xf32>
    %161 = arith.truncf %160 : vector<8x8xf32> to vector<8x8xbf16>
    %162 = arith.truncf %146 : vector<8x8xf32> to vector<8x8xbf16>
    %cst_52 = arith.constant dense<0.000000e+00> : vector<8x8xf32>
    %163 = tpu.matmul %161, %162, %cst_52 {dimension_numbers = #tpu.dot_dimension_numbers<[1], [0], [0], [1], [0, 0, 1, 1], [], []>} : vector<8x8xbf16>, vector<8x8xbf16>, vector<8x8xf32> -> vector<8x8xf32>
    %164 = vector.extract_strided_slice %62 {offsets = [0, 16], sizes = [8, 8], strides = [1, 1]} : vector<8x32xf32> to vector<8x8xf32>
    %165 = vector.extract_strided_slice %164 {offsets = [0, 4], sizes = [8, 4], strides = [1, 1]} : vector<8x8xf32> to vector<8x4xf32>
    %cst_53 = arith.constant 0.000000e+00 : f32
    %166 = vector.broadcast %cst_53 : f32 to vector<8x4xf32>
    %167 = arith.subf %166, %165 : vector<8x4xf32>
    %168 = vector.extract_strided_slice %164 {offsets = [0, 0], sizes = [8, 4], strides = [1, 1]} : vector<8x8xf32> to vector<8x4xf32>
    %169 = tpu.concatenate %167, %168 in 1 : vector<8x4xf32>, vector<8x4xf32> -> vector<8x8xf32>
    %170 = arith.mulf %164, %86 : vector<8x8xf32>
    %171 = arith.mulf %169, %87 : vector<8x8xf32>
    %172 = arith.addf %170, %171 : vector<8x8xf32>
    %cst_54 = arith.constant 0.353553385 : f32
    %173 = vector.broadcast %cst_54 : f32 to vector<8x8xf32>
    %174 = arith.mulf %172, %173 : vector<8x8xf32>
    %175 = vector.extract_strided_slice %84 {offsets = [0, 16], sizes = [8, 8], strides = [1, 1]} : vector<8x32xf32> to vector<8x8xf32>
    %176 = vector.extract_strided_slice %175 {offsets = [0, 4], sizes = [8, 4], strides = [1, 1]} : vector<8x8xf32> to vector<8x4xf32>
    %cst_55 = arith.constant 0.000000e+00 : f32
    %177 = vector.broadcast %cst_55 : f32 to vector<8x4xf32>
    %178 = arith.subf %177, %176 : vector<8x4xf32>
    %179 = vector.extract_strided_slice %175 {offsets = [0, 0], sizes = [8, 4], strides = [1, 1]} : vector<8x8xf32> to vector<8x4xf32>
    %180 = tpu.concatenate %178, %179 in 1 : vector<8x4xf32>, vector<8x4xf32> -> vector<8x8xf32>
    %181 = arith.mulf %175, %86 : vector<8x8xf32>
    %182 = arith.mulf %180, %87 : vector<8x8xf32>
    %183 = arith.addf %181, %182 : vector<8x8xf32>
    %184 = vector.extract_strided_slice %85 {offsets = [0, 16], sizes = [8, 8], strides = [1, 1]} : vector<8x32xf32> to vector<8x8xf32>
    %185 = arith.truncf %174 : vector<8x8xf32> to vector<8x8xbf16>
    %186 = arith.truncf %183 : vector<8x8xf32> to vector<8x8xbf16>
    %cst_56 = arith.constant dense<0.000000e+00> : vector<8x8xf32>
    %187 = tpu.matmul %185, %186, %cst_56 {dimension_numbers = #tpu.dot_dimension_numbers<[1], [1], [0], [0], [0, 0, 1, 0], [], []>} : vector<8x8xbf16>, vector<8x8xbf16>, vector<8x8xf32> -> vector<8x8xf32>
    %188 = arith.addf %187, %13 : vector<8x8xf32>
    %cst_57 = arith.constant dense<0xFF800000> : vector<8xf32>
    %189 = vector.multi_reduction <maximumf>, %188, %cst_57 [1] : vector<8x8xf32> to vector<8xf32>
    %190 = vector.shape_cast %189 : vector<8xf32> to vector<8x1xf32>
    %191 = vector.broadcast %190 : vector<8x1xf32> to vector<8x8xf32>
    %192 = arith.subf %188, %191 : vector<8x8xf32>
    %193 = math.exp %192 : vector<8x8xf32>
    %cst_58 = arith.constant dense<0.000000e+00> : vector<8xf32>
    %194 = vector.multi_reduction <add>, %193, %cst_58 [1] : vector<8x8xf32> to vector<8xf32>
    %195 = vector.shape_cast %194 : vector<8xf32> to vector<8x1xf32>
    %196 = tpu.reciprocal %195 {approx = true} : vector<8x1xf32> -> vector<8x1xf32>
    %197 = vector.broadcast %196 : vector<8x1xf32> to vector<8x8xf32>
    %198 = arith.mulf %193, %197 : vector<8x8xf32>
    %199 = arith.truncf %198 : vector<8x8xf32> to vector<8x8xbf16>
    %200 = arith.truncf %184 : vector<8x8xf32> to vector<8x8xbf16>
    %cst_59 = arith.constant dense<0.000000e+00> : vector<8x8xf32>
    %201 = tpu.matmul %199, %200, %cst_59 {dimension_numbers = #tpu.dot_dimension_numbers<[1], [0], [0], [1], [0, 0, 1, 1], [], []>} : vector<8x8xbf16>, vector<8x8xbf16>, vector<8x8xf32> -> vector<8x8xf32>
    %202 = vector.extract_strided_slice %62 {offsets = [0, 24], sizes = [8, 8], strides = [1, 1]} : vector<8x32xf32> to vector<8x8xf32>
    %203 = vector.extract_strided_slice %202 {offsets = [0, 4], sizes = [8, 4], strides = [1, 1]} : vector<8x8xf32> to vector<8x4xf32>
    %cst_60 = arith.constant 0.000000e+00 : f32
    %204 = vector.broadcast %cst_60 : f32 to vector<8x4xf32>
    %205 = arith.subf %204, %203 : vector<8x4xf32>
    %206 = vector.extract_strided_slice %202 {offsets = [0, 0], sizes = [8, 4], strides = [1, 1]} : vector<8x8xf32> to vector<8x4xf32>
    %207 = tpu.concatenate %205, %206 in 1 : vector<8x4xf32>, vector<8x4xf32> -> vector<8x8xf32>
    %208 = arith.mulf %202, %86 : vector<8x8xf32>
    %209 = arith.mulf %207, %87 : vector<8x8xf32>
    %210 = arith.addf %208, %209 : vector<8x8xf32>
    %cst_61 = arith.constant 0.353553385 : f32
    %211 = vector.broadcast %cst_61 : f32 to vector<8x8xf32>
    %212 = arith.mulf %210, %211 : vector<8x8xf32>
    %213 = vector.extract_strided_slice %84 {offsets = [0, 24], sizes = [8, 8], strides = [1, 1]} : vector<8x32xf32> to vector<8x8xf32>
    %214 = vector.extract_strided_slice %213 {offsets = [0, 4], sizes = [8, 4], strides = [1, 1]} : vector<8x8xf32> to vector<8x4xf32>
    %cst_62 = arith.constant 0.000000e+00 : f32
    %215 = vector.broadcast %cst_62 : f32 to vector<8x4xf32>
    %216 = arith.subf %215, %214 : vector<8x4xf32>
    %217 = vector.extract_strided_slice %213 {offsets = [0, 0], sizes = [8, 4], strides = [1, 1]} : vector<8x8xf32> to vector<8x4xf32>
    %218 = tpu.concatenate %216, %217 in 1 : vector<8x4xf32>, vector<8x4xf32> -> vector<8x8xf32>
    %219 = arith.mulf %213, %86 : vector<8x8xf32>
    %220 = arith.mulf %218, %87 : vector<8x8xf32>
    %221 = arith.addf %219, %220 : vector<8x8xf32>
    %222 = vector.extract_strided_slice %85 {offsets = [0, 24], sizes = [8, 8], strides = [1, 1]} : vector<8x32xf32> to vector<8x8xf32>
    %223 = arith.truncf %212 : vector<8x8xf32> to vector<8x8xbf16>
    %224 = arith.truncf %221 : vector<8x8xf32> to vector<8x8xbf16>
    %cst_63 = arith.constant dense<0.000000e+00> : vector<8x8xf32>
    %225 = tpu.matmul %223, %224, %cst_63 {dimension_numbers = #tpu.dot_dimension_numbers<[1], [1], [0], [0], [0, 0, 1, 0], [], []>} : vector<8x8xbf16>, vector<8x8xbf16>, vector<8x8xf32> -> vector<8x8xf32>
    %226 = arith.addf %225, %13 : vector<8x8xf32>
    %cst_64 = arith.constant dense<0xFF800000> : vector<8xf32>
    %227 = vector.multi_reduction <maximumf>, %226, %cst_64 [1] : vector<8x8xf32> to vector<8xf32>
    %228 = vector.shape_cast %227 : vector<8xf32> to vector<8x1xf32>
    %229 = vector.broadcast %228 : vector<8x1xf32> to vector<8x8xf32>
    %230 = arith.subf %226, %229 : vector<8x8xf32>
    %231 = math.exp %230 : vector<8x8xf32>
    %cst_65 = arith.constant dense<0.000000e+00> : vector<8xf32>
    %232 = vector.multi_reduction <add>, %231, %cst_65 [1] : vector<8x8xf32> to vector<8xf32>
    %233 = vector.shape_cast %232 : vector<8xf32> to vector<8x1xf32>
    %234 = tpu.reciprocal %233 {approx = true} : vector<8x1xf32> -> vector<8x1xf32>
    %235 = vector.broadcast %234 : vector<8x1xf32> to vector<8x8xf32>
    %236 = arith.mulf %231, %235 : vector<8x8xf32>
    %237 = arith.truncf %236 : vector<8x8xf32> to vector<8x8xbf16>
    %238 = arith.truncf %222 : vector<8x8xf32> to vector<8x8xbf16>
    %cst_66 = arith.constant dense<0.000000e+00> : vector<8x8xf32>
    %239 = tpu.matmul %237, %238, %cst_66 {dimension_numbers = #tpu.dot_dimension_numbers<[1], [0], [0], [1], [0, 0, 1, 1], [], []>} : vector<8x8xbf16>, vector<8x8xbf16>, vector<8x8xf32> -> vector<8x8xf32>
    %240 = tpu.concatenate %125, %163, %201, %239 in 1 : vector<8x8xf32>, vector<8x8xf32>, vector<8x8xf32>, vector<8x8xf32> -> vector<8x32xf32>
    %241 = arith.truncf %240 : vector<8x32xf32> to vector<8x32xbf16>
    %c0_67 = arith.constant 0 : index
    %c0_68 = arith.constant 0 : index
    %242 = vector.load %arg11[%c0_67, %c0_68] : memref<32x32xbf16, #tpu.memory_space<vmem>>, vector<32x32xbf16>
    %cst_69 = arith.constant dense<0.000000e+00> : vector<8x32xf32>
    %243 = tpu.matmul %241, %242, %cst_69 {dimension_numbers = #tpu.dot_dimension_numbers<[1], [0], [0], [1], [0, 0, 1, 1], [], []>} : vector<8x32xbf16>, vector<32x32xbf16>, vector<8x32xf32> -> vector<8x32xf32>
    %cst_70 = arith.constant 4.2426405 : f32
    %244 = vector.broadcast %cst_70 : f32 to vector<8x32xf32>
    %245 = arith.mulf %243, %244 : vector<8x32xf32>
    %246 = arith.addf %6, %245 : vector<8x32xf32>
    %247 = arith.truncf %246 : vector<8x32xf32> to vector<8x32xbf16>
    %c0_71 = arith.constant 0 : index
    %c0_72 = arith.constant 0 : index
    %c0_73 = arith.constant 0 : index
    %248 = vector.load %arg12[%c0_71, %c0_72, %c0_73] : memref<1x8x32xbf16, #tpu.memory_space<vmem>>, vector<1x8x32xbf16>
    %249 = vector.shape_cast %248 : vector<1x8x32xbf16> to vector<8x32xbf16>
    %250 = vector.shape_cast %247 : vector<8x32xbf16> to vector<1x8x32xbf16>
    tpu.vector_store %arg12[%c0_71, %c0_72, %c0_73], %250 {strides = array<i32>} : memref<1x8x32xbf16, #tpu.memory_space<vmem>>, vector<1x8x32xbf16>,
    return
  }
  func.func @transform_0(%arg0: i32) -> (i32, i32, i32) {
    %c0_i32 = arith.constant 0 : i32
    %c0_i32_0 = arith.constant 0 : i32
    %c0_i32_1 = arith.constant 0 : i32
    return %arg0, %c0_i32, %c0_i32_0 : i32, i32, i32
  }
  func.func @transform_1(%arg0: i32) -> (i32, i32, i32) {
    %c0_i32 = arith.constant 0 : i32
    %c0_i32_0 = arith.constant 0 : i32
    %c0_i32_1 = arith.constant 0 : i32
    return %arg0, %c0_i32, %c0_i32_0 : i32, i32, i32
  }
  func.func @transform_2(%arg0: i32) -> (i32, i32, i32) {
    %c0_i32 = arith.constant 0 : i32
    %c0_i32_0 = arith.constant 0 : i32
    %c0_i32_1 = arith.constant 0 : i32
    return %arg0, %c0_i32, %c0_i32_0 : i32, i32, i32
  }
  func.func @transform_3(%arg0: i32) -> (i32, i32) {
    %c0_i32 = arith.constant 0 : i32
    %c0_i32_0 = arith.constant 0 : i32
    %c0_i32_1 = arith.constant 0 : i32
    return %c0_i32, %c0_i32_0 : i32, i32
  }
  func.func @transform_4(%arg0: i32) -> (i32, i32) {
    %c0_i32 = arith.constant 0 : i32
    %c0_i32_0 = arith.constant 0 : i32
    %c0_i32_1 = arith.constant 0 : i32
    return %c0_i32, %c0_i32_0 : i32, i32
  }
  func.func @transform_5(%arg0: i32) -> (i32, i32) {
    %c0_i32 = arith.constant 0 : i32
    %c0_i32_0 = arith.constant 0 : i32
    %c0_i32_1 = arith.constant 0 : i32
    return %c0_i32, %c0_i32_0 : i32, i32
  }
  func.func @transform_6(%arg0: i32) -> (i32, i32) {
    %c0_i32 = arith.constant 0 : i32
    %c0_i32_0 = arith.constant 0 : i32
    %c0_i32_1 = arith.constant 0 : i32
    return %c0_i32, %c0_i32_0 : i32, i32
  }
  func.func @transform_7(%arg0: i32) -> (i32, i32) {
    %c0_i32 = arith.constant 0 : i32
    %c0_i32_0 = arith.constant 0 : i32
    %c0_i32_1 = arith.constant 0 : i32
    return %c0_i32, %c0_i32_0 : i32, i32
  }
  func.func @transform_8(%arg0: i32) -> (i32, i32) {
    %c0_i32 = arith.constant 0 : i32
    %c0_i32_0 = arith.constant 0 : i32
    %c0_i32_1 = arith.constant 0 : i32
    return %c0_i32, %c0_i32_0 : i32, i32
  }
  func.func @transform_9(%arg0: i32) -> (i32, i32) {
    %c0_i32 = arith.constant 0 : i32
    %c0_i32_0 = arith.constant 0 : i32
    %c0_i32_1 = arith.constant 0 : i32
    return %c0_i32, %c0_i32_0 : i32, i32
  }
  func.func @transform_10(%arg0: i32) -> (i32, i32) {
    %c0_i32 = arith.constant 0 : i32
    %c0_i32_0 = arith.constant 0 : i32
    %c0_i32_1 = arith.constant 0 : i32
    return %c0_i32, %c0_i32_0 : i32, i32
  }
  func.func @transform_11(%arg0: i32) -> (i32, i32, i32) {
    %c0_i32 = arith.constant 0 : i32
    %c0_i32_0 = arith.constant 0 : i32
    %c0_i32_1 = arith.constant 0 : i32
    return %arg0, %c0_i32, %c0_i32_0 : i32, i32, i32
  }
}

</mosaic_0001>

<bundles_post_ra>
// kernel: tpu_custom_call.1
= control target key start
LH: loop header
LB: loop body
LE: loop exit
PB: predicated region body
PF: predicated region fallthrough
CT: control target
= control target key end

     0   :  { %s2692_s0 = inlined_call_operand.hbm [shape: f32[2,1,32], index: 0, kind: input, shape index: {}]   ;;  %s2693_s1 = inlined_call_operand.hbm [shape: bf16[2,8,32], index: 1, kind: input, shape index: {}]   ;;  %s2694_s2 = inlined_call_operand.hbm [shape: s8[2,8,8], index: 2, kind: input, shape index: {}]   ;;  %s2695_s3 = inlined_call_operand.hbm [shape: f32[8,8], index: 3, kind: input, shape index: {}]   ;;  %s2696_s4 = inlined_call_operand.hbm [shape: f32[8,8], index: 4, kind: input, shape index: {}]   ;;  %s2697_s5 = inlined_call_operand.vmem [shape: f32[1,32], index: 5, kind: input, shape index: {}]   ;;  %s2698_s6 = inlined_call_operand.vmem [shape: f32[1,32], index: 6, kind: input, shape index: {}]   ;;  %s2699_s7 = inlined_call_operand.vmem [shape: bf16[32,96], index: 7, kind: input, shape index: {}]   ;;  %s2700_s8 = inlined_call_operand.hbm [shape: f32[1,32], index: 8, kind: input, shape index: {}]   ;;  %s2701_s9 = inlined_call_operand.hbm [shape: f32[1,32], index: 9, kind: input, shape index: {}]   ;;  %s2702_s10 = inlined_call_operand.vmem [shape: bf16[32,32], index: 10, kind: input, shape index: {}]   ;;  %s2703_s11 = inlined_call_operand.hbm [shape: bf16[2,8,32], index: 11, kind: output, shape index: {}]  }
   0x1   :  { %2722 = sst [smem:[#allocation26_spill]] %s2693_s1 }
   0x2   :  { %2723 = sst [smem:[#allocation27_spill]] %s2695_s3 }
   0x3   :  { %2724 = sst [smem:[#allocation28_spill]] %s2700_s8 }
   0x4   :  { %2725 = sst [smem:[#allocation29_spill]] %s2703_s11 }
   0x5   :  { %16 = vsyncpa [#allocation3], 0 }
   0x6   :  { %18 = vsyncpa [#allocation3 + $0x1], 0 }
   0x7   :  { %19 = vsyncpa [#allocation6], 0 }
   0x8   :  { %21 = vsyncpa [#allocation6 + $0x1], 0 }
   0x9   :  { %22 = vsyncpa [#allocation9], 0 }
   0xa   :  { %23 = vsyncpa [#allocation12], 0 }
   0xb   :  { %24 = vsyncpa [#allocation4], 0 }
   0xc   :  { %26 = vsyncpa [#allocation4 + $0x1], 0  ;;  %s2178_s17 = smov 0   ;;  %s2180_s18 = smov 0  }
   0xd   :  { %s2182_s19 = smov 0   ;;  %s2184_s20 = smov 0  }
   0xe LB: > { %2726 = sst [smem:[#allocation20_spill]] %s2070_s17  ;;  %s2084_s21 = smov [#allocation8]   ;;  %s2082_s20 = sphi %s2184_s20, %s2761_s20   ;;  %s2078_s19 = sphi %s2182_s19, %s2763_s19   ;;  %s2074_s18 = sphi %s2180_s18, %s2765_s18   ;;  %s2070_s17 = sphi %s2178_s17, %s2764_s17  }
   0xf   : > { %2727 = sst [smem:[#allocation21_spill]] %s2078_s19  ;;  %s322_s22 = sshll.u32 %s2084_s21, 4  ;;  %s323_s22 = int_to_ptr.vmem [resolvable:$true] %s322_s22 }
  0x10   : > { %s2199_s23 = sadd.s32 4294967295, %s2082_s20   ;;  %p1524_p0 = scmp.ge.s32.totalorder %s2082_s20, 1 }
  0x11   : > { %p2704_p1 = scmp.eq.s32.totalorder %s2199_s23, 0  ;;  %p309_p2 = scmp.lt.s32.totalorder %s2082_s20, 3 }
  0x12   : > { %s2085_s25 = smov [#allocation11]   ;;  %s2730_s3 = sld [smem:[#allocation27_spill]] }
  0x13   : > { %p2204_p3 = pnand %p1524_p0, %p309_p2  ;;  %s353_s26 = sshll.u32 %s2085_s25, 4  ;;  %s2211_s26 = int_to_ptr.vmem [resolvable:$true] %s353_s26 }
  0x15   : > { %s2728_s24 = scalar_select %p2204_p3, 1, 0 }
  0x16   : > { %p1677_p5 = pneg %p2204_p3 }
  0x18   : > { %p2215_p6 = pnand %p1677_p5, %p2704_p1  ;;  %s1802_s30 = scalar_lea.hbm %s2730_s3, 128 }
  0x19   : > { %p1803_p7 = scmp.ne.s32.totalorder %s2730_s3, %s1802_s30  ;;  %p1809_p11 = scmp.lt.u32.totalorder %s1802_s30, %s2730_s3 }
  0x1a   : > { %s2729_s27 = scalar_select %p2215_p6, 1, 0 }
  0x1b   : > { %p2227_p8 = pneg %p2215_p6 }
  0x1d   : > { %s2731_s14 = scalar_select %p2227_p8, 1, 0 }
  0x1e   : > { %p1805_p9 = pnand %p2227_p8, %p1803_p7 }
  0x20   : > { %p1806_p10 = pneg %p1805_p9 }
  0x22   : > { %p1811_p12 = pnand %p1809_p11, %p1806_p10 }
  0x24   : > { %1814 = shalt.err (!%p1811_p12)
}
  0x25   : > { %s1815_s21 = scalar_lea.vmem %s323_s22, 128  ;;  %p1823_p5 = scmp.lt.s32.totalorder %s323_s22, %s323_s22 }
  0x26   : > { %p1816_p13 = scmp.ne.s32.totalorder %s323_s22, %s1815_s21  ;;  %p1824_p4 = scmp.lt.s32.totalorder %s1815_s21, %s1815_s21 }
  0x28   : > { %p1818_p0 = pnand %p1816_p13, %p2227_p8  ;;  %p1825_p1 = por %p1824_p4, %p1823_p5 }
  0x2a   : > { %p1819_p2 = pneg %p1818_p0 }
  0x2c   : > { %p1826_p3 = pnand %p1825_p1, %p1819_p2 }
  0x2e   : > { %1829 = shalt.err (!%p1826_p3)
}
  0x2f   : > { %1680 = dma.hbm_to_vmem [thread:$0]  (!%p2215_p6), %s2730_s3, 128, %s323_s22, [#allocation9]  }
  0x30   : > { %s2732_s8 = sld [smem:[#allocation28_spill]] }
  0x36   : > { %s1830_s12 = scalar_lea.hbm %s2732_s8, 16 }
  0x37   : > { %p1831_p7 = scmp.ne.s32.totalorder %s2732_s8, %s1830_s12  ;;  %p1837_p1 = scmp.lt.u32.totalorder %s1830_s12, %s2732_s8 }
  0x39   : > { %p1833_p9 = pnand %p1831_p7, %p2227_p8 }
  0x3b   : > { %p1834_p4 = pneg %p1833_p9 }
  0x3d   : > { %p1839_p3 = pnand %p1837_p1, %p1834_p4 }
  0x3f   : > { %1842 = shalt.err (!%p1839_p3)
}
  0x40   : > { %s1843_s22 = scalar_lea.vmem %s2211_s26, 16  ;;  %s1850_s25 = scalar_lea.vmem %s2211_s26, 32 }
  0x41   : > { %p1844_p10 = scmp.ne.s32.totalorder %s2211_s26, %s1843_s22  ;;  %p1851_p13 = scmp.lt.s32.totalorder %s2211_s26, %s2211_s26 }
  0x42   : > { %p1852_p0 = scmp.lt.s32.totalorder %s1850_s25, %s1843_s22 }
  0x43   : > { %p1846_p11 = pnand %p1844_p10, %p2227_p8 }
  0x44   : > { %p1853_p2 = por %p1852_p0, %p1851_p13 }
  0x45   : > { %p1847_p12 = pneg %p1846_p11 }
  0x47   : > { %p1854_p5 = pnand %p1853_p2, %p1847_p12 }
  0x49   : > { %1857 = shalt.err (!%p1854_p5)
}
  0x4a   : > { %1686 = dma.hbm_to_vmem [thread:$0]  (!%p2215_p6), %s2732_s8, 16, %s2211_s26, [#allocation12]  }
  0x4b   : > { %s1523_s30 = sadd.s32 4294967294, %s2082_s20   ;;  %s2269_s12 = sadd.s32 1, %s2082_s20  }
  0x4c   : > { %2733 = sst [smem:[#allocation22_spill]] %s2269_s12  ;;  %s36_s13 = ssub.s32 %s2082_s20, %s2269_s12 }
  0x4d   : > { %s39_s15 = sadd.s32 1, %s2078_s19  ;;  %p37_p7 = scmp.eq.s32.totalorder %s36_s13, 0 }
  0x4e   : > { %p46_p9 = scmp.ne.s32.totalorder %s2078_s19, %s2074_s18  ;;  %p47_p4 = scmp.eq.s32.totalorder %s2082_s20, 0 }
  0x4f   : > { %p52_p1 = scmp.ne.s32.totalorder %s2074_s18, %s2070_s17  ;;  %p2735_p10 = scmp.eq.s32.totalorder %s2199_s23, 0 }
  0x50   : > { %s2280_s16 = scalar_select %p37_p7, %s2078_s19, %s39_s15  }
  0x51   : > { %p48_p3 = por %p47_p4, %p46_p9  ;;  %p2284_p11 = por %p2735_p10, %p52_p1 }
  0x52   : > { %2734 = sst [smem:[#allocation23_spill]] %s2280_s16  ;;  %p296_p12 = scmp.eq.s32.totalorder %s2199_s23, 1 }
  0x53   : > { %s2736_s21 = scalar_select %p2284_p11, 1, 0 }
  0x54   : > { %p302_p13 = scmp.eq.s32.totalorder %s1523_s30, 1  ;;  %p1708_p0 = scmp.lt.s32.totalorder %s2082_s20, 2 }
  0x55   : > { %s2291_s26 = sand.u32 1, %s2078_s19   ;;  %p2293_p2 = por %p296_p12, %p46_p9 }
  0x56   : > { %p2297_p5 = por %p302_p13, %p52_p1  ;;  %p2301_p7 = pnand %p1708_p0, %p48_p3 }
  0x57   : > { %s2737_s22 = scalar_select %p2293_p2, 1, 0 }
  0x58   : > { %s2739_s25 = scalar_select %p2297_p5, 1, 0 }
  0x59   : > { %2738 = sst [smem:[#allocation24_spill]] %s2737_s22  ;;  %s395_s29 = sand.u32 1, %s2082_s20  }
  0x5a   : > { %2740 = sst [smem:[#allocation25_spill]] %s2739_s25  ;;  %s1531_s13 = sshll.u32 %s2291_s26, 2 }
  0x5b   : > { %s2741_s28 = scalar_select %p2301_p7, 1, 0 }
  0x5c   : > { %s1532_s30 = sshll.u32 %s2082_s20, 6  ;;  %s399_s15 = scalar_lea.vmem [#allocation5], %s1531_s13 }
  0x5d   : > { %s406_s3 = sshll.u32 %s399_s15, 4  ;;  %s2742_s1 = sld [smem:[#allocation26_spill]]  ;;  %s2313_s3 = int_to_ptr.vmem [resolvable:$true] %s406_s3 }
  0x5e   : > { %s2315_s12 = scalar_lea.sflag [#allocation6], %s395_s29  ;;  %p2321_p4 = pneg %p2301_p7 }
  0x63   : > { %s2311_s19 = scalar_lea.hbm %s2742_s1, %s1532_s30  ;;  %s1863_s13 = scalar_lea.hbm %s2742_s1, 128 }
  0x64   : > { %s1858_s25 = scalar_lea.hbm %s2311_s19, 64  ;;  %p1864_p10 = scmp.lt.u32.totalorder %s2311_s19, %s2742_s1 }
  0x65   : > { %p1859_p9 = scmp.ne.s32.totalorder %s2311_s19, %s1858_s25  ;;  %p1865_p12 = scmp.lt.u32.totalorder %s1863_s13, %s1858_s25 }
  0x66   : > { %p1867_p0 = scmp.lt.u32.totalorder %s1858_s25, %s2311_s19 }
  0x67   : > { %p1861_p1 = pnand %p2321_p4, %p1859_p9  ;;  %p1866_p13 = por %p1865_p12, %p1864_p10 }
  0x69   : > { %p1862_p3 = pneg %p1861_p1  ;;  %p1868_p5 = por %p1867_p0, %p1866_p13 }
  0x6b   : > { %p1869_p2 = pnand %p1868_p5, %p1862_p3 }
  0x6d   : > { %1872 = shalt.err (!%p1869_p2)
}
  0x6e   : > { %s1873_s29 = scalar_lea.vmem %s2313_s3, 64  ;;  %s2086_s8 = smov [#allocation5]  }
  0x6f   : > { %p1874_p9 = scmp.ne.s32.totalorder %s2313_s3, %s1873_s29  ;;  %s1878_s16 = sshll.u32 %s2086_s8, 4  ;;  %s1879_s16 = int_to_ptr.vmem [resolvable:$false] %s1878_s16 }
  0x70   : > { %s1880_s30 = scalar_lea.vmem %s1879_s16, 128  ;;  %p1881_p6 = scmp.lt.s32.totalorder %s2313_s3, %s1879_s16 }
  0x71   : > { %p1876_p1 = pnand %p1874_p9, %p2321_p4  ;;  %p1882_p8 = scmp.lt.s32.totalorder %s1880_s30, %s1873_s29 }
  0x73   : > { %p1877_p11 = pneg %p1876_p1  ;;  %p1883_p10 = por %p1882_p8, %p1881_p6 }
  0x75   : > { %p1884_p12 = pnand %p1883_p10, %p1877_p11 }
  0x77   : > { %1887 = shalt.err (!%p1884_p12)
}
  0x78   : > { %1696 = dma.hbm_to_vmem [thread:$0]  (!%p2301_p7), %s2311_s19, 64, %s2313_s3, %s2315_s12  }
  0x79   : > { %s2087_s25 = smov [#allocation10]   ;;  %s2088_s15 = smov [#allocation13]  }
  0x7a   : > { %s333_s13 = sshll.u32 %s2087_s25, 4  ;;  %s364_s1 = sshll.u32 %s2088_s15, 4  ;;  %s334_s13 = int_to_ptr.vmem [resolvable:$true] %s333_s13  ;;  %s2345_s1 = int_to_ptr.vmem [resolvable:$true] %s364_s1 }
  0x7b   : > { %s1888_s29 = scalar_lea.hbm %s2696_s4, 128  ;;  %p2744_p8 = scmp.ne.s32.totalorder %s2731_s14, 0 }
  0x7c   : > { %p1889_p6 = scmp.ne.s32.totalorder %s2696_s4, %s1888_s29  ;;  %p1895_p5 = scmp.lt.u32.totalorder %s1888_s29, %s2696_s4 }
  0x7e   : > { %p1891_p11 = pnand %p1889_p6, %p2744_p8 }
  0x80   : > { %p1892_p2 = pneg %p1891_p11 }
  0x82   : > { %p1897_p3 = pnand %p1895_p5, %p1892_p2 }
  0x84   : > { %1900 = shalt.err (!%p1897_p3)
}
  0x85   : > { %s1901_s19 = scalar_lea.vmem %s334_s13, 128  ;;  %p1909_p1 = scmp.lt.s32.totalorder %s334_s13, %s334_s13 }
  0x86   : > { %p1902_p13 = scmp.ne.s32.totalorder %s334_s13, %s1901_s19  ;;  %p1910_p10 = scmp.lt.s32.totalorder %s1901_s19, %s1901_s19 }
  0x88   : > { %p1904_p0 = pnand %p1902_p13, %p2744_p8  ;;  %p1911_p12 = por %p1910_p10, %p1909_p1 }
  0x8a   : > { %p1905_p9 = pneg %p1904_p0 }
  0x8c   : > { %p1912_p7 = pnand %p1911_p12, %p1905_p9 }
  0x8e   : > { %1915 = shalt.err (!%p1912_p7)
}
  0x8f   : > { %p2745_p6 = scmp.ne.s32.totalorder %s2729_s27, 0  ;;  %s1916_s8 = scalar_lea.hbm %s2701_s9, 16 }
  0x90   : > { %p1917_p11 = scmp.ne.s32.totalorder %s2701_s9, %s1916_s8  ;;  %p1923_p7 = scmp.lt.u32.totalorder %s1916_s8, %s2701_s9 }
  0x91   : > { %1683 = dma.hbm_to_vmem [thread:$0]  (!%p2745_p6), %s2696_s4, 128, %s334_s13, [#allocation9]  }
  0x92   : > { %p1919_p2 = pnand %p1917_p11, %p2744_p8 }
  0x94   : > { %p1920_p5 = pneg %p1919_p2 }
  0x96   : > { %p1925_p3 = pnand %p1923_p7, %p1920_p5 }
  0x98   : > { %1928 = shalt.err (!%p1925_p3)
}
  0x99   : > { %s1929_s13 = scalar_lea.vmem %s2345_s1, 16  ;;  %s1936_s19 = scalar_lea.vmem %s2345_s1, 32 }
  0x9a   : > { %p1930_p13 = scmp.ne.s32.totalorder %s2345_s1, %s1929_s13  ;;  %p1937_p1 = scmp.lt.s32.totalorder %s2345_s1, %s2345_s1 }
  0x9b   : > { %p1938_p10 = scmp.lt.s32.totalorder %s1936_s19, %s1929_s13 }
  0x9c   : > { %p1932_p0 = pnand %p1930_p13, %p2744_p8 }
  0x9d   : > { %p1939_p12 = por %p1938_p10, %p1937_p1 }
  0x9e   : > { %p1933_p9 = pneg %p1932_p0 }
  0xa0   : > { %p1940_p11 = pnand %p1939_p12, %p1933_p9 }
  0xa2   : > { %1943 = shalt.err (!%p1940_p11)
}
  0xa3   : > { %1689 = dma.hbm_to_vmem [thread:$0]  (!%p2745_p6), %s2701_s9, 16, %s2345_s1, [#allocation12]  }
  0xa4   : > { %s1530_s14 = sshll.u32 %s2082_s20, 4  ;;  %s381_s22 = scalar_lea.vmem [#allocation2], %s2291_s26 }
  0xa5   : > { %s388_s15 = sshll.u32 %s381_s22, 4  ;;  %s2394_s29 = scalar_lea.hbm %s2692_s0, %s1530_s14  ;;  %s389_s15 = int_to_ptr.vmem [resolvable:$true] %s388_s15 }
  0xa6   : > { %s379_s27 = scalar_lea.sflag [#allocation3], %s2291_s26  ;;  %s1944_s30 = scalar_lea.hbm %s2394_s29, 16 }
  0xa7   : > { %p1945_p8 = scmp.ne.s32.totalorder %s2394_s29, %s1944_s30  ;;  %s1949_s13 = scalar_lea.hbm %s2692_s0, 32 }
  0xa8   : > { %p1950_p6 = scmp.lt.u32.totalorder %s2394_s29, %s2692_s0  ;;  %p1951_p7 = scmp.lt.u32.totalorder %s1949_s13, %s1944_s30 }
  0xa9   : > { %p1947_p2 = pnand %p1945_p8, %p2321_p4  ;;  %p1953_p13 = scmp.lt.u32.totalorder %s1944_s30, %s2394_s29 }
  0xaa   : > { %p1952_p3 = por %p1951_p7, %p1950_p6 }
  0xab   : > { %p1948_p5 = pneg %p1947_p2 }
  0xac   : > { %p1954_p0 = por %p1953_p13, %p1952_p3 }
  0xae   : > { %p1955_p9 = pnand %p1954_p0, %p1948_p5 }
  0xb0   : > { %1958 = shalt.err (!%p1955_p9)
}
  0xb1   : > { %s1959_s25 = scalar_lea.vmem %s389_s15, 16  ;;  %s2089_s14 = smov [#allocation2]  }
  0xb2   : > { %p1960_p1 = scmp.ne.s32.totalorder %s389_s15, %s1959_s25  ;;  %s1964_s22 = sshll.u32 %s2089_s14, 4  ;;  %s1965_s22 = int_to_ptr.vmem [resolvable:$false] %s1964_s22 }
  0xb3   : > { %s1966_s8 = scalar_lea.vmem %s1965_s22, 32  ;;  %p1967_p11 = scmp.lt.s32.totalorder %s389_s15, %s1965_s22 }
  0xb4   : > { %p1962_p10 = pnand %p1960_p1, %p2321_p4  ;;  %p1968_p8 = scmp.lt.s32.totalorder %s1966_s8, %s1959_s25 }
  0xb6   : > { %p1963_p12 = pneg %p1962_p10  ;;  %p1969_p2 = por %p1968_p8, %p1967_p11 }
  0xb8   : > { %p1970_p6 = pnand %p1969_p2, %p1963_p12 }
  0xba   : > { %1973 = shalt.err (!%p1970_p6)
}
  0xbb   : > { %p2746_p7 = scmp.ne.s32.totalorder %s2741_s28, 0  ;;  %s1533_s16 = sshll.u32 %s2291_s26, 1 }
  0xbc   : > { %s1534_s30 = sshll.u32 %s2082_s20, 5  ;;  %s417_s19 = scalar_lea.vmem [#allocation7], %s1533_s16 }
  0xbd   : > { %1693 = dma.hbm_to_vmem [thread:$0]  (!%p2746_p7), %s2394_s29, 16, %s389_s15, %s379_s27  }
  0xbe   : > { %s2419_s13 = scalar_lea.hbm %s2694_s2, %s1534_s30  ;;  %s424_s11 = sshll.u32 %s417_s19, 4  ;;  %s425_s11 = int_to_ptr.vmem [resolvable:$true] %s424_s11 }
  0xbf   : > { %s1974_s25 = scalar_lea.hbm %s2419_s13, 32  ;;  %s1979_s29 = scalar_lea.hbm %s2694_s2, 64 }
  0xc0   : > { %p1975_p5 = scmp.ne.s32.totalorder %s2419_s13, %s1974_s25  ;;  %p1980_p0 = scmp.lt.u32.totalorder %s2419_s13, %s2694_s2 }
  0xc1   : > { %p1981_p9 = scmp.lt.u32.totalorder %s1979_s29, %s1974_s25  ;;  %p1983_p10 = scmp.lt.u32.totalorder %s1974_s25, %s2419_s13 }
  0xc2   : > { %p1977_p3 = pnand %p1975_p5, %p2321_p4 }
  0xc3   : > { %p1982_p1 = por %p1981_p9, %p1980_p0 }
  0xc4   : > { %p1978_p13 = pneg %p1977_p3 }
  0xc5   : > { %p1984_p12 = por %p1983_p10, %p1982_p1 }
  0xc7   : > { %p1985_p11 = pnand %p1984_p12, %p1978_p13 }
  0xc9   : > { %1988 = shalt.err (!%p1985_p11)
}
  0xca   : > { %s1989_s22 = scalar_lea.vmem %s425_s11, 32  ;;  %s2090_s8 = smov [#allocation7]  }
  0xcb   : > { %p1990_p8 = scmp.ne.s32.totalorder %s425_s11, %s1989_s22  ;;  %s1994_s16 = sshll.u32 %s2090_s8, 4  ;;  %s1995_s16 = int_to_ptr.vmem [resolvable:$false] %s1994_s16 }
  0xcc   : > { %s1996_s30 = scalar_lea.vmem %s1995_s16, 64  ;;  %p1997_p5 = scmp.lt.s32.totalorder %s425_s11, %s1995_s16 }
  0xcd   : > { %p1992_p2 = pnand %p1990_p8, %p2321_p4  ;;  %p1998_p3 = scmp.lt.s32.totalorder %s1996_s30, %s1989_s22 }
  0xcf   : > { %p1993_p6 = pneg %p1992_p2  ;;  %p1999_p7 = por %p1998_p3, %p1997_p5 }
  0xd1   : > { %p2000_p0 = pnand %p1999_p7, %p1993_p6 }
  0xd3   : > { %2003 = shalt.err (!%p2000_p0)
}
  0xd4   : > { %p2747_p9 = scmp.ne.s32.totalorder %s2741_s28, 0  ;;  %p2748_p13 = scmp.ne.s32.totalorder %s2728_s24, 0 }
  0xd5   : > { %s2442_s17 = sand.u32 (!%p2748_p13), 1, %s2074_s18   ;;  %p2749_p4 = scmp.ne.s32.totalorder (!%p2748_p13), %s2736_s21, 0 }
  0xd6   : > { %1699 = dma.hbm_to_vmem [thread:$0]  (!%p2747_p9), %s2419_s13, 32, %s425_s11, %s2315_s12  }
  0xd7   : > { %433 = sbr.rel (%p2748_p13) target bundleno = 2824 (0xb08), region = 64  ;;  %s436_s1 = scalar_lea.sflag (!%p2748_p13), [#allocation3], %s2442_s17 }
  0xd8   : > { %s438_s3 = scalar_lea.vmem (!%p2748_p13), [#allocation2], %s2442_s17 }
  0xde   : > { %2049 = dma.done.wait (%p2749_p4), %s436_s1, 16  }
  0xdf   : > { %2051 = vsyncadd (%p2749_p4), %s436_s1, 4294967280  ;;  %s443_s12 = sand.u32 1, %s2199_s23   ;;  %s1536_s24 = sshll.u32 %s2442_s17, 2 }
  0xe0   : > { %s444_s28 = scalar_lea.sflag [#allocation6], %s443_s12  ;;  %s447_s13 = scalar_lea.vmem [#allocation5], %s1536_s24 }
  0xe1   : > { %2053 = dma.done.wait (%p2749_p4), %s444_s28, 96  }
  0xe2   : > { %2055 = vsyncadd (%p2749_p4), %s444_s28, 4294967200  ;;  %s1537_s19 = sshll.u32 %s2442_s17, 1  ;;  %p2750_p7 = scmp.eq.s32.totalorder %s2199_s23, 0 }
  0xe3   : > { %s2459_s11 = scalar_lea.vmem [#allocation7], %s1537_s19 }
  0xe4   : > { %2057 = dma.done.wait (%p2750_p7), [#allocation9], 256   ;;  %p2751_p1 = pmov %p2750_p7 }
  0xe6   : > { %2059 = vsyncadd (%p2751_p1), [#allocation9], 4294967040  ;;  %p2752_p10 = pmov %p2751_p1 }
  0xe7   : > { %p2753_p12 = pmov %p2751_p1 }
  0xe8   : > { %2061 = dma.done.wait (%p2752_p10), [#allocation12], 32  }
  0xe9   : > { %2063 = vsyncadd (%p2753_p12), [#allocation12], 4294967264  ;;  %vm538_vm0 = vcmask 261120   ;;  %v521_v0 = vld [vmem:[%s447_s13] sm:$0xf]  ;;  %v2091_v11 = vmov 0.0  }
  0xea   : > { %v1543_v1 = vld [vmem:[%s438_s3] ss:$0 sm:$0xff]  ;;  %v522_v2 = vunpack.c.l.bf16 %v521_v0  ;;  %1589 = vmatprep.subr.bf16.mxu0 %v2091_v11  ;;  %vm2092_vm1 = vmmov 0   ;;  %v1777_v12 = vld [vmem:[%s2699_s7 + $0x8] sm:$0xff]   ;;  %1597 = vmatprep.subr.bf16.mxu1 %v2091_v11  ;;  %s2093_s8 = smov 96   ;;  %s2094_s16 = smov 32  }
  0xeb   : > { %v1776_v10 = vld [vmem:[%s2699_s7] sm:$0xff]   ;;  %1593 = vmatprep.mubr.msk.bf16.mxu0 %vm2092_vm1, %v2091_v11  ;;  %1599 = vmatprep.mubr.msk.bf16.mxu1 %vm2092_vm1, %v2091_v11  ;;  %v1550_v44 = vld [vmem:[#allocation11] ss:$0 sm:$0xff]  ;;  %s2095_s30 = smov 116   ;;  %s2096_s1 = smov 92   ;;  %v2521_v58 = vld [vmem:[#allocation8] sm:$0xff] }
  0xec   : > { %v2469_v3 = vadd.f32 %v1543_v1, %v522_v2  ;;  %1590 = vmatpush3.bf16.msra.mxu0 %v1776_v10  ;;  %v1545_v17 = vld [vmem:[%s2697_s5] ss:$0 sm:$0xff]  ;;  %s2097_s3 = smov 100   ;;  %s2098_s12 = smov 108   ;;  %vm690_vm2 = vcmask 31744   ;;  %v2542_v61 = vld [vmem:[#allocation10] sm:$0xff] }
  0xed   : > { %1591 = vmatprep.subr.bf16.mxu0 %v2091_v11  ;;  %v1546_v19 = vld [vmem:[%s2698_s6] ss:$0 sm:$0xff]  ;;  %s2099_s28 = smov 68   ;;  %s2100_s13 = smov 124   ;;  %vm722_vm3 = vcmask 64512   ;;  %vm788_vm4 = vcmask 1043456  }
  0xee   : > { %v539_v4 = vsel %vm538_vm0, %v2469_v3, 0.0  ;;  %v1551_v35 = vld [vmem:[#allocation13] ss:$0 sm:$0xff]  ;;  %s2101_s19 = smov 84   ;;  %s2102_s21 = smov 40   ;;  %vm1292_vm5 = vcmask 130048  }
  0xef   : > { %540 = vadd.xlane.f32.xlu0 %v539_v4  ;;  %s2103_s25 = smov 76   ;;  %s2104_s15 = smov 8   ;;  %vm1294_vm6 = vcmask 195584   ;;  %vm1359_vm7 = vcmask 257024  }
  0xf0   : > { %1592 = vmatpush3.bf16.msra.mxu0 %v1777_v12  ;;  %s2105_s26 = smov 48   ;;  %s2106_s29 = smov 16  }
  0xf1   : > { %1603 = vmatprep.subr.bf16.mxu0 %v2091_v11  ;;  %s2107_s27 = smov 56   ;;  %s2108_s14 = smov 24  }
  0xf2   : > { %s2109_s22 = smov 4  }
 0x17c   : > { %v541_v5 = vpop.xlane.xlu0 %540 }
 0x17d   : > { %v543_v6 = vmul.f32 0.03125, %v541_v5 }
 0x17f   : > { %v544_v7 = vsub.f32 %v2469_v3, %v543_v6 }
 0x181   : > { %v545_v8 = vmul.f32 %v544_v7, %v544_v7 }
 0x183   : > { %v546_v9 = vsel %vm538_vm0, %v545_v8, 0.0 }
 0x184   : > { %547 = vadd.xlane.f32.xlu0 %v546_v9 }
 0x211   : > { %v548_v13 = vpop.xlane.xlu0 %547 }
 0x212   : > { %v549_v14 = vmul.f32 0.03125, %v548_v13 }
 0x214   : > { %v550_v15 = vadd.f32 1e-05, %v549_v14 }
 0x216   : > { %1780 = vrsqrt.f32 %v550_v15 }
 0x220   : > { %v1781_v16 = vpop.eup %1780 }
 0x221   : > { %v552_v18 = vmul.f32 %v1781_v16, %v544_v7 }
 0x223   : > { %v559_v20 = vmul.f32 %v1545_v17, %v552_v18 }
 0x225   : > { %v566_v21 = vadd.f32 %v1546_v19, %v559_v20 }
 0x227   : > { %v567_v22 = vpack.c.bf16 %v566_v21, %v566_v21 }
 0x229   : > { %1594 = vmatmul.mubr.msk.bf16.vlgmr.msra.gmra.mrb[0].mxu0 %vm538_vm0, %v567_v22 }
 0x22a   : > { %1605 = vmatprep.mubr.msk.bf16.mxu0 %vm2092_vm1, %v2091_v11 }
 0x2fc   : > { %v2498_v23 = vpop.f32.mrb[0].mxu0 }
 0x2fd   : > { %650 = vrot.lane.b32.xlu1 %v2498_v23, %s2093_s8  ;;  %v1595_v24 = vpop.f32.mrb[1].mxu0  ;;  %v628_v25 = vsel %vm538_vm0, %v2498_v23, 0.0 }
 0x2fe   : > { %629 = vadd.xlane.f32.xlu0 %v628_v25  ;;  %v624_v26 = vpop.f32.mrb[2].mxu0 }
 0x2ff   : > { %v1596_v27 = vpop.f32.mrb[3].mxu0 }
 0x36f   : > { %v651_v28 = vpop.permute.xlu1 %650 }
 0x370   : > { %v653_v29 = vsel %vm538_vm0, %v651_v28, 0.0 }
 0x371   : > { %654 = vadd.xlane.f32.xlu1 %v653_v29 }
 0x38b   : > { %v630_v30 = vpop.xlane.xlu0 %629 }
 0x38c   : > { %v631_v31 = vmul.f32 0.03125, %v630_v30 }
 0x38e   : > { %v632_v32 = vsub.f32 %v2498_v23, %v631_v31 }
 0x390   : > { %v633_v33 = vmul.f32 %v632_v32, %v632_v32 }
 0x392   : > { %v634_v34 = vsel %vm538_vm0, %v633_v33, 0.0 }
 0x393   : > { %635 = vadd.xlane.f32.xlu1 %v634_v34 }
 0x3a4   : > { %675 = vrot.lane.b32.xlu1 %v1551_v35, %s2094_s16 }
 0x3fe   : > { %v655_v36 = vpop.xlane.xlu1 %654 }
 0x3ff   : > { %v656_v37 = vmul.f32 0.03125, %v655_v36 }
 0x401   : > { %v657_v38 = vsub.f32 %v2498_v23, %v656_v37 }
 0x403   : > { %v658_v39 = vmul.f32 %v657_v38, %v657_v38 }
 0x405   : > { %660 = vrot.lane.b32.xlu0 %v658_v39, %s2093_s8 }
 0x420   : > { %v636_v40 = vpop.xlane.xlu1 %635 }
 0x421   : > { %v637_v41 = vmul.f32 0.03125, %v636_v40 }
 0x423   : > { %v638_v42 = vadd.f32 1e-05, %v637_v41 }
 0x424   : > { %v676_v55 = vpop.permute.xlu1 %675 }
 0x425   : > { %1782 = vrsqrt.f32 %v638_v42 }
 0x42f   : > { %v1783_v43 = vpop.eup %1782 }
 0x430   : > { %v640_v45 = vmul.f32 %v1783_v43, %v632_v32 }
 0x432   : > { %v2510_v46 = vmul.f32 %v1550_v44, %v640_v45 }
 0x434   : > { %v681_v47 = vsub.f32 0.0, %v2510_v46 }
 0x436   : > { %832 = vrot.lane.b32.xlu1 %v681_v47, %s2095_s30 }
 0x477   : > { %v661_v48 = vpop.permute.xlu0 %660 }
 0x478   : > { %v663_v49 = vsel %vm538_vm0, %v661_v48, 0.0 }
 0x479   : > { %664 = vadd.xlane.f32.xlu0 %v663_v49 }
 0x4a8   : > { %v833_v59 = vpop.permute.xlu1 %832 }
 0x506   : > { %v665_v50 = vpop.xlane.xlu0 %664 }
 0x507   : > { %v666_v51 = vmul.f32 0.03125, %v665_v50 }
 0x509   : > { %v667_v52 = vadd.f32 1e-05, %v666_v51 }
 0x50b   : > { %1784 = vrsqrt.f32 %v667_v52 }
 0x515   : > { %v1785_v53 = vpop.eup %1784 }
 0x516   : > { %v669_v54 = vmul.f32 %v1785_v53, %v657_v38 }
 0x518   : > { %v2515_v56 = vmul.f32 %v676_v55, %v669_v54 }
 0x51a   : > { %853 = vrot.lane.b32.xlu1 %v2515_v56, %s2096_s1  ;;  %702 = vrot.lane.b32.xlu0 %v2515_v56, %s2097_s3  ;;  %v696_v57 = vsub.f32 0.0, %v2515_v56 }
 0x51e   : > { %981 = vrot.lane.b32.xlu0 %v681_v47, %s2098_s12  ;;  %698 = vrot.lane.b32.xlu1 %v696_v57, %s2096_s1  ;;  %s2113_s1 = smov 112  }
 0x522   : > { %1148 = vrot.lane.b32.xlu0 %v696_v57, %s2099_s28  ;;  %835 = vrot.lane.b32.xlu1 %v2510_v46, %s2100_s13 }
 0x526   : > { %1130 = vrot.lane.b32.xlu0 %v681_v47, %s2097_s3  ;;  %850 = vrot.lane.b32.xlu1 %v696_v57, %s2101_s19  ;;  %s2114_s3 = smov 72  }
 0x52a   : > { %707 = vrot.lane.b32.xlu0 %v2521_v58, %s2094_s16  ;;  %1002 = vrot.lane.b32.xlu1 %v2515_v56, %s2101_s19 }
 0x52e   : > { %857 = vrot.lane.b32.xlu0 %v2521_v58, %s2102_s21  ;;  %999 = vrot.lane.b32.xlu1 %v696_v57, %s2103_s25 }
 0x532   : > { %839 = vrot.lane.b32.xlu0 %v2521_v58, %s2104_s15  ;;  %984 = vrot.lane.b32.xlu1 %v2510_v46, %s2095_s30  ;;  %s2112_s30 = smov 80  }
 0x536   : > { %1006 = vrot.lane.b32.xlu0 %v2521_v58, %s2105_s26  ;;  %1151 = vrot.lane.b32.xlu1 %v2515_v56, %s2103_s25  ;;  %s2754_s25 = sld [smem:[#allocation24_spill]] }
 0x53a   : > { %988 = vrot.lane.b32.xlu0 %v2521_v58, %s2106_s29  ;;  %1133 = vrot.lane.b32.xlu1 %v2510_v46, %s2098_s12  ;;  %s2115_s12 = smov 104  }
 0x53c   : > { %p2756_p8 = scmp.ne.s32.totalorder %s2754_s25, 0 }
 0x53e   : > { %1155 = vrot.lane.b32.xlu0 %v2521_v58, %s2107_s27 }
 0x542   : > { %1137 = vrot.lane.b32.xlu0 %v2521_v58, %s2108_s14 }
 0x546   : > { %683 = vrot.lane.b32.xlu0 %v681_v47, %s2100_s13 }
 0x58c   : > { %v854_v60 = vpop.permute.xlu1 %853  ;;  %v703_v62 = vpop.permute.xlu0 %702 }
 0x590   : > { %v699_v63 = vpop.permute.xlu1 %698  ;;  %v982_v10 = vpop.permute.xlu0 %981 }
 0x591   : > { %v705_v0 = vsel %vm690_vm2, %v699_v63, %v703_v62 }
 0x592   : > { %v711_v1 = vmul.f32 %v705_v0, %v2542_v61 }
 0x594   : > { %713 = vrot.lane.b32.xlu1 %v711_v1, %s2094_s16  ;;  %v836_v2 = vpop.permute.xlu1 %835  ;;  %v1149_v17 = vpop.permute.xlu0 %1148  ;;  %s2110_s16 = smov 88  }
 0x595   : > { %v838_v7 = vsel %vm690_vm2, %v833_v59, %v836_v2 }
 0x596   : > { %v843_v9 = vmul.f32 %v838_v7, %v2542_v61 }
 0x598   : > { %v851_v4 = vpop.permute.xlu1 %850  ;;  %v1131_v22 = vpop.permute.xlu0 %1130 }
 0x599   : > { %v856_v5 = vsel %vm690_vm2, %v851_v4, %v854_v60 }
 0x59a   : > { %v861_v6 = vmul.f32 %v856_v5, %v2542_v61 }
 0x59c   : > { %863 = vrot.lane.b32.xlu1 %v861_v6, %s2102_s21  ;;  %v1003_v8 = vpop.permute.xlu1 %1002  ;;  %v708_v27 = vpop.permute.xlu0 %707 }
 0x59d   : > { %v710_v29 = vmul.f32 %v708_v27, %v2515_v56 }
 0x5a0   : > { %845 = vrot.lane.b32.xlu1 %v843_v9, %s2104_s15  ;;  %v1000_v12 = vpop.permute.xlu1 %999  ;;  %v858_v28 = vpop.permute.xlu0 %857  ;;  %v692_v9 = vmul.f32 %v2521_v58, %v2510_v46 }
 0x5a1   : > { %v1005_v13 = vsel %vm690_vm2, %v1000_v12, %v1003_v8  ;;  %v860_v35 = vmul.f32 %v858_v28, %v2515_v56 }
 0x5a2   : > { %v1010_v14 = vmul.f32 %v1005_v13, %v2542_v61 }
 0x5a4   : > { %1012 = vrot.lane.b32.xlu1 %v1010_v14, %s2105_s26  ;;  %v985_v15 = vpop.permute.xlu1 %984  ;;  %v840_v30 = vpop.permute.xlu0 %839 }
 0x5a5   : > { %v987_v16 = vsel %vm690_vm2, %v982_v10, %v985_v15  ;;  %v842_v38 = vmul.f32 %v840_v30, %v2510_v46 }
 0x5a6   : > { %v992_v18 = vmul.f32 %v987_v16, %v2542_v61 }
 0x5a8   : > { %994 = vrot.lane.b32.xlu1 %v992_v18, %s2106_s29  ;;  %v1152_v19 = vpop.permute.xlu1 %1151  ;;  %v1007_v34 = vpop.permute.xlu0 %1006 }
 0x5a9   : > { %v1154_v20 = vsel %vm690_vm2, %v1149_v17, %v1152_v19  ;;  %v1009_v43 = vmul.f32 %v1007_v34, %v2515_v56 }
 0x5aa   : > { %v1159_v21 = vmul.f32 %v1154_v20, %v2542_v61 }
 0x5ac   : > { %1161 = vrot.lane.b32.xlu1 %v1159_v21, %s2107_s27  ;;  %v1134_v24 = vpop.permute.xlu1 %1133  ;;  %v989_v40 = vpop.permute.xlu0 %988 }
 0x5ad   : > { %v1136_v25 = vsel %vm690_vm2, %v1131_v22, %v1134_v24  ;;  %v991_v50 = vmul.f32 %v989_v40, %v2510_v46  ;;  %v531_v22 = vld [vmem:[%s2459_s11] sm:$0x3]  ;;  %s2116_s11 = smov 64  }
 0x5ae   : > { %v1141_v26 = vmul.f32 %v1136_v25, %v2542_v61  ;;  %v532_v24 = vunpack.c.0.s8 %v531_v22 }
 0x5b0   : > { %1143 = vrot.lane.b32.xlu1 %v1141_v26, %s2108_s14  ;;  %v1156_v49 = vpop.permute.xlu0 %1155  ;;  %v533_v25 = vcvt.s32.f32 %v532_v24 }
 0x5b1   : > { %v1158_v54 = vmul.f32 %v1156_v49, %v2515_v56 }
 0x5b2   : > { %v1544_v26 = vadd.f32 -1.0, %v533_v25 }
 0x5b4   : > { %687 = vrot.lane.b32.xlu1 %v2510_v46, %s2109_s22  ;;  %v1138_v57 = vpop.permute.xlu0 %1137  ;;  %v535_v27 = vmul.f32 1e+30, %v1544_v26  ;;  %s2755_s22 = sld [smem:[#allocation29_spill]] }
 0x5b5   : > { %v1140_v63 = vmul.f32 %v1138_v57, %v2510_v46 }
 0x5b8   : > { %v684_v56 = vpop.permute.xlu0 %683 }
 0x606   : > { %v714_v31 = vpop.permute.xlu1 %713 }
 0x607   : > { %v716_v32 = vadd.f32 %v714_v31, %v710_v29 }
 0x609   : > { %v718_v33 = vpack.c.bf16 %v716_v32, %v716_v32 }
 0x60b   : > { %720 = vrot.lane.b32.xlu0 %v718_v33, %s2093_s8  ;;  %s2111_s8 = smov 120  }
 0x60e   : > { %v864_v36 = vpop.permute.xlu1 %863 }
 0x60f   : > { %v866_v37 = vadd.f32 %v864_v36, %v860_v35 }
 0x611   : > { %v868_v39 = vpack.c.bf16 %v866_v37, %v866_v37 }
 0x612   : > { %v846_v41 = vpop.permute.xlu1 %845 }
 0x613   : > { %v848_v42 = vadd.f32 %v846_v41, %v842_v38  ;;  %873 = vrot.lane.b32.xlu1 %v868_v39, %s2110_s16 }
 0x615   : > { %v849_v44 = vmul.f32 0.35355338, %v848_v42 }
 0x616   : > { %v1013_v45 = vpop.permute.xlu1 %1012 }
 0x617   : > { %v867_v47 = vpack.c.bf16 %v849_v44, %v849_v44  ;;  %v1015_v48 = vadd.f32 %v1013_v45, %v1009_v43 }
 0x619   : > { %v1017_v51 = vpack.c.bf16 %v1015_v48, %v1015_v48  ;;  %870 = vrot.lane.b32.xlu0 %v867_v47, %s2111_s8 }
 0x61a   : > { %v995_v52 = vpop.permute.xlu1 %994 }
 0x61b   : > { %v997_v53 = vadd.f32 %v995_v52, %v991_v50  ;;  %1022 = vrot.lane.b32.xlu1 %v1017_v51, %s2112_s30 }
 0x61d   : > { %v998_v55 = vmul.f32 0.35355338, %v997_v53 }
 0x61e   : > { %v1162_v59 = vpop.permute.xlu1 %1161 }
 0x61f   : > { %v1016_v60 = vpack.c.bf16 %v998_v55, %v998_v55  ;;  %v1164_v62 = vadd.f32 %v1162_v59, %v1158_v54 }
 0x621   : > { %v1166_v0 = vpack.c.bf16 %v1164_v62, %v1164_v62  ;;  %1019 = vrot.lane.b32.xlu0 %v1016_v60, %s2113_s1 }
 0x622   : > { %v1144_v1 = vpop.permute.xlu1 %1143 }
 0x623   : > { %v1146_v2 = vadd.f32 %v1144_v1, %v1140_v63  ;;  %1171 = vrot.lane.b32.xlu1 %v1166_v0, %s2114_s3 }
 0x625   : > { %v1147_v4 = vmul.f32 0.35355338, %v1146_v2 }
 0x626   : > { %v688_v6 = vpop.permute.xlu1 %687 }
 0x627   : > { %v1165_v5 = vpack.c.bf16 %v1147_v4, %v1147_v4  ;;  %v691_v7 = vsel %vm690_vm2, %v684_v56, %v688_v6 }
 0x628   : > { %v693_v8 = vmul.f32 %v691_v7, %v2542_v61  ;;  %v781_v7 = vpack.c.bf16 %v2498_v23, %v2498_v23 }
 0x629   : > { %1168 = vrot.lane.b32.xlu0 %v1165_v5, %s2115_s12 }
 0x62a   : > { %v694_v10 = vadd.f32 %v693_v8, %v692_v9 }
 0x62c   : > { %v695_v14 = vmul.f32 0.35355338, %v694_v10 }
 0x62e   : > { %v717_v15 = vpack.c.bf16 %v695_v14, %v695_v14 }
 0x67d   : > { %v721_v12 = vpop.permute.xlu0 %720 }
 0x67e   : > { %v727_v13 = vsel %vm722_vm3, %v721_v12, 0 }
 0x67f   : > { %1598 = vmatpush3.bf16.xpose.msra.mxu1 %v727_v13 }
 0x680   : > { %1609 = vmatprep.subr.bf16.mxu1 %v2091_v11 }
 0x685   : > { %v874_v16 = vpop.permute.xlu1 %873 }
 0x686   : > { %v879_v17 = vsel %vm722_vm3, %v874_v16, 0  ;;  %1600 = vmatmul.mubr.msk.bf16.vlgmr.msra.gmra.mrb[0].mxu1 %vm722_vm3, %v717_v15 }
 0x687   : > { %1610 = vmatpush3.bf16.xpose.msra.mxu1 %v879_v17  ;;  %1611 = vmatprep.mubr.msk.bf16.mxu1 %vm2092_vm1, %v2091_v11 }
 0x688   : > { %1621 = vmatprep.subr.bf16.mxu1 %v2091_v11 }
 0x68b   : > { %v871_v46 = vpop.permute.xlu0 %870 }
 0x68d   : > { %v1023_v58 = vpop.permute.xlu1 %1022 }
 0x68e   : > { %v1028_v61 = vsel %vm722_vm3, %v1023_v58, 0  ;;  %1612 = vmatmul.mubr.msk.bf16.vlgmr.msra.gmra.mrb[4].mxu1 %vm722_vm3, %v871_v46 }
 0x68f   : > { %1622 = vmatpush3.bf16.xpose.msra.mxu1 %v1028_v61  ;;  %1623 = vmatprep.mubr.msk.bf16.mxu1 %vm2092_vm1, %v2091_v11 }
 0x690   : > { %1633 = vmatprep.subr.bf16.mxu1 %v2091_v11 }
 0x693   : > { %v1020_v18 = vpop.permute.xlu0 %1019 }
 0x695   : > { %v1172_v19 = vpop.permute.xlu1 %1171 }
 0x696   : > { %v1177_v20 = vsel %vm722_vm3, %v1172_v19, 0  ;;  %1624 = vmatmul.mubr.msk.bf16.vlgmr.msra.gmra.mrb[8].mxu1 %vm722_vm3, %v1020_v18 }
 0x697   : > { %1634 = vmatpush3.bf16.xpose.msra.mxu1 %v1177_v20  ;;  %1635 = vmatprep.mubr.msk.bf16.mxu1 %vm2092_vm1, %v2091_v11 }
 0x698   : > { %1645 = vmatprep.subr.bf16.mxu1 %v2091_v11 }
 0x69b   : > { %v1169_v21 = vpop.permute.xlu0 %1168 }
 0x69e   : > { %1636 = vmatmul.mubr.msk.bf16.vlgmr.msra.gmra.mrb[12].mxu1 %vm722_vm3, %v1169_v21 }
 0x69f   : > { %1649 = vmatprep.mubr.msk.bf16.mxu1 %vm2092_vm1, %v2091_v11 }
 0x759   : > { %v763_v28 = vpop.f32.mrb[0].mxu1 }
 0x75a   : > { %v764_v29 = vadd.f32 %v763_v28, %v535_v27  ;;  %v1601_v30 = vpop.f32.mrb[1].mxu1 }
 0x75b   : > { %v766_v31 = vpop.f32.mrb[2].mxu1 }
 0x75c   : > { %v1602_v32 = vpop.f32.mrb[3].mxu1  ;;  %v769_v33 = vsel %vm722_vm3, %v764_v29, -inf }
 0x75d   : > { %770 = vmax.xlane.f32.xlu1 %v769_v33 }
 0x761   : > { %v915_v34 = vpop.f32.mrb[4].mxu1 }
 0x762   : > { %v916_v35 = vadd.f32 %v915_v34, %v535_v27  ;;  %v1613_v36 = vpop.f32.mrb[5].mxu1 }
 0x763   : > { %v918_v37 = vpop.f32.mrb[6].mxu1 }
 0x764   : > { %v1614_v38 = vpop.f32.mrb[7].mxu1  ;;  %v921_v39 = vsel %vm722_vm3, %v916_v35, -inf }
 0x765   : > { %922 = vmax.xlane.f32.xlu0 %v921_v39 }
 0x769   : > { %v1064_v40 = vpop.f32.mrb[8].mxu1 }
 0x76a   : > { %v1065_v41 = vadd.f32 %v1064_v40, %v535_v27  ;;  %v1625_v42 = vpop.f32.mrb[9].mxu1 }
 0x76b   : > { %v1067_v43 = vpop.f32.mrb[10].mxu1 }
 0x76c   : > { %v1626_v44 = vpop.f32.mrb[11].mxu1  ;;  %v1070_v45 = vsel %vm722_vm3, %v1065_v41, -inf  ;;  %v1778_v43 = vld [vmem:[%s2702_s10] sm:$0xff]  }
 0x76d   : > { %1071 = vmax.xlane.f32.xlu0 %v1070_v45  ;;  %1646 = vmatpush3.bf16.msra.mxu1 %v1778_v43  ;;  %v1779_v44 = vld [vmem:[%s2702_s10 + $0x8] sm:$0xff]  }
 0x76e   : > { %1647 = vmatprep.subr.bf16.mxu1 %v2091_v11 }
 0x771   : > { %v1213_v47 = vpop.f32.mrb[12].mxu1  ;;  %1648 = vmatpush3.bf16.msra.mxu1 %v1779_v44 }
 0x772   : > { %v1214_v48 = vadd.f32 %v1213_v47, %v535_v27  ;;  %v1637_v49 = vpop.f32.mrb[13].mxu1 }
 0x773   : > { %v1216_v50 = vpop.f32.mrb[14].mxu1 }
 0x774   : > { %v1638_v51 = vpop.f32.mrb[15].mxu1  ;;  %v1219_v52 = vsel %vm722_vm3, %v1214_v48, -inf }
 0x775   : > { %1220 = vmax.xlane.f32.xlu1 %v1219_v52 }
 0x7ea   : > { %v771_v53 = vpop.xlane.xlu1 %770 }
 0x7eb   : > { %v772_v54 = vsub.f32 %v764_v29, %v771_v53 }
 0x7ed   : > { %v773_v55 = vmul.f32 1.442695, %v772_v54 }
 0x7ef   : > { %1786 = vpow2.f32 %v773_v55 }
 0x7f2   : > { %v923_v57 = vpop.xlane.xlu0 %922 }
 0x7f3   : > { %v924_v59 = vsub.f32 %v916_v35, %v923_v57 }
 0x7f5   : > { %v925_v60 = vmul.f32 1.442695, %v924_v59 }
 0x7f7   : > { %1788 = vpow2.f32 %v925_v60 }
 0x7f9   : > { %v1787_v62 = vpop.eup %1786 }
 0x7fa   : > { %v1072_v63 = vpop.xlane.xlu0 %1071  ;;  %v775_v0 = vsel %vm722_vm3, %v1787_v62, 0.0 }
 0x7fb   : > { %v1073_v1 = vsub.f32 %v1065_v41, %v1072_v63  ;;  %776 = vadd.xlane.f32.xlu0 %v775_v0 }
 0x7fd   : > { %v1074_v2 = vmul.f32 1.442695, %v1073_v1 }
 0x7ff   : > { %1790 = vpow2.f32 %v1074_v2 }
 0x801   : > { %v1789_v4 = vpop.eup %1788 }
 0x802   : > { %v927_v5 = vsel %vm722_vm3, %v1789_v4, 0.0  ;;  %v1221_v8 = vpop.xlane.xlu1 %1220 }
 0x803   : > { %928 = vadd.xlane.f32.xlu1 %v927_v5  ;;  %v1222_v9 = vsub.f32 %v1214_v48, %v1221_v8 }
 0x805   : > { %v1223_v10 = vmul.f32 1.442695, %v1222_v9 }
 0x807   : > { %1792 = vpow2.f32 %v1223_v10 }
 0x809   : > { %v1791_v6 = vpop.eup %1790 }
 0x80a   : > { %v1076_v56 = vsel %vm722_vm3, %v1791_v6, 0.0 }
 0x80b   : > { %1077 = vadd.xlane.f32.xlu0 %v1076_v56 }
 0x811   : > { %v1793_v12 = vpop.eup %1792 }
 0x812   : > { %v1225_v13 = vsel %vm722_vm3, %v1793_v12, 0.0 }
 0x814   : > { %933 = vrot.lane.b32.xlu1 %v781_v7, %s2107_s27 }
 0x821   : > { %783 = vrot.lane.b32.xlu0 %v781_v7, %s2116_s11 }
 0x825   : > { %1231 = vrot.lane.b32.xlu0 %v781_v7, %s2102_s21 }
 0x838   : > { %1226 = vadd.xlane.f32.xlu1 %v1225_v13 }
 0x849   : > { %1082 = vrot.lane.b32.xlu1 %v781_v7, %s2105_s26  ;;  %s519_s26 = scalar_lea.vmem [#allocation14], %s1536_s24  ;;  %s2117_s24 = smov [#allocation14]  }
 0x84a   : > { %s2008_s30 = sshll.u32 %s2117_s24, 4  ;;  %s2009_s30 = int_to_ptr.vmem [resolvable:$false] %s2008_s30 }
 0x84b   : > { %s2010_s1 = scalar_lea.vmem %s2009_s30, 128 }
 0x888   : > { %v777_v14 = vpop.xlane.xlu0 %776 }
 0x889   : > { %1794 = vrcp.f32 %v777_v14 }
 0x890   : > { %v929_v15 = vpop.xlane.xlu1 %928 }
 0x891   : > { %1796 = vrcp.f32 %v929_v15 }
 0x893   : > { %v1795_v23 = vpop.eup %1794 }
 0x894   : > { %v779_v17 = vmul.f32 %v1795_v23, %v1787_v62  ;;  %v934_v61 = vpop.permute.xlu1 %933 }
 0x895   : > { %v939_v20 = vsel %vm788_vm4, %v934_v61, 0 }
 0x896   : > { %v780_v18 = vpack.c.bf16 %v779_v17, %v779_v17 }
 0x898   : > { %v1078_v16 = vpop.xlane.xlu0 %1077 }
 0x899   : > { %1798 = vrcp.f32 %v1078_v16 }
 0x89b   : > { %v1797_v19 = vpop.eup %1796 }
 0x89c   : > { %v784_v46 = vpop.permute.xlu0 %783  ;;  %v931_v21 = vmul.f32 %v1797_v19, %v1789_v4 }
 0x89d   : > { %v790_v58 = vsel %vm788_vm4, %v784_v46, 0 }
 0x89e   : > { %1604 = vmatpush3.bf16.msra.mxu0 %v790_v58  ;;  %v932_v22 = vpack.c.bf16 %v931_v21, %v931_v21 }
 0x89f   : > { %1615 = vmatprep.subr.bf16.mxu0 %v2091_v11 }
 0x8a0   : > { %v1232_v29 = vpop.permute.xlu0 %1231 }
 0x8a1   : > { %1606 = vmatmul.mubr.msk.bf16.vlgmr.msra.gmra.mrb[4].mxu0 %vm722_vm3, %v780_v18  ;;  %v1237_v31 = vsel %vm788_vm4, %v1232_v29, 0 }
 0x8a2   : > { %1616 = vmatpush3.bf16.msra.mxu0 %v939_v20  ;;  %1617 = vmatprep.mubr.msk.bf16.mxu0 %vm2092_vm1, %v2091_v11 }
 0x8a3   : > { %1627 = vmatprep.subr.bf16.mxu0 %v2091_v11  ;;  %v1799_v24 = vpop.eup %1798 }
 0x8a4   : > { %v1080_v26 = vmul.f32 %v1799_v24, %v1791_v6 }
 0x8a6   : > { %v1081_v30 = vpack.c.bf16 %v1080_v26, %v1080_v26 }
 0x8a9   : > { %1618 = vmatmul.mubr.msk.bf16.vlgmr.msra.gmra.mrb[8].mxu0 %vm722_vm3, %v932_v22 }
 0x8aa   : > { %1629 = vmatprep.mubr.msk.bf16.mxu0 %vm2092_vm1, %v2091_v11 }
 0x8c5   : > { %v1227_v25 = vpop.xlane.xlu1 %1226 }
 0x8c6   : > { %1800 = vrcp.f32 %v1227_v25 }
 0x8c9   : > { %v1083_v27 = vpop.permute.xlu1 %1082 }
 0x8ca   : > { %v1088_v28 = vsel %vm788_vm4, %v1083_v27, 0 }
 0x8cb   : > { %1628 = vmatpush3.bf16.msra.mxu0 %v1088_v28 }
 0x8cc   : > { %1639 = vmatprep.subr.bf16.mxu0 %v2091_v11 }
 0x8ce   : > { %1630 = vmatmul.mubr.msk.bf16.vlgmr.msra.gmra.mrb[12].mxu0 %vm722_vm3, %v1081_v30 }
 0x8cf   : > { %1640 = vmatpush3.bf16.msra.mxu0 %v1237_v31  ;;  %1641 = vmatprep.mubr.msk.bf16.mxu0 %vm2092_vm1, %v2091_v11 }
 0x8d0   : > { %v1801_v32 = vpop.eup %1800 }
 0x8d1   : > { %v1229_v33 = vmul.f32 %v1801_v32, %v1793_v12 }
 0x8d3   : > { %v1230_v34 = vpack.c.bf16 %v1229_v33, %v1229_v33 }
 0x8d6   : > { %1642 = vmatmul.mubr.msk.bf16.vlgmr.msra.gmra.mrb[16].mxu0 %vm722_vm3, %v1230_v34 }
 0x974   : > { %v826_v35 = vpop.f32.mrb[4].mxu0 }
 0x975   : > { %v1607_v36 = vpop.f32.mrb[5].mxu0 }
 0x976   : > { %v829_v37 = vpop.f32.mrb[6].mxu0 }
 0x977   : > { %v1608_v38 = vpop.f32.mrb[7].mxu0 }
 0x97c   : > { %v975_v39 = vpop.f32.mrb[8].mxu0 }
 0x97d   : > { %1280 = vrot.lane.b32.xlu1 %v975_v39, %s2104_s15  ;;  %v1619_v40 = vpop.f32.mrb[9].mxu0  ;;  %s1564_s15 = sshll.u32 %s2199_s23, 6  ;;  %s1362_s23 = scalar_lea.sflag [#allocation4], %s2442_s17 }
 0x97e   : > { %v978_v41 = vpop.f32.mrb[10].mxu0  ;;  %s2648_s16 = scalar_lea.hbm %s2755_s22, %s1564_s15 }
 0x97f   : > { %v1620_v42 = vpop.f32.mrb[11].mxu0 }
 0x9a1   : > { %v1124_v45 = vpop.f32.mrb[12].mxu0 }
 0x9a2   : > { %1284 = vrot.lane.b32.xlu0 %v1124_v45, %s2106_s29  ;;  %v1631_v47 = vpop.f32.mrb[13].mxu0  ;;  %s1375_s29 = sshll.u32 %s519_s26, 4  ;;  %s2650_s29 = int_to_ptr.vmem [resolvable:$true] %s1375_s29 }
 0x9a3   : > { %v1127_v48 = vpop.f32.mrb[14].mxu0  ;;  %s2004_s8 = scalar_lea.vmem %s2650_s29, 64  ;;  %p2011_p5 = scmp.lt.s32.totalorder %s2650_s29, %s2009_s30 }
 0x9a4   : > { %v1632_v49 = vpop.f32.mrb[15].mxu0  ;;  %p2005_p11 = scmp.ne.s32.totalorder %s2650_s29, %s2004_s8  ;;  %p2012_p3 = scmp.lt.s32.totalorder %s2010_s1, %s2004_s8 }
 0x9a6   : > { %p2006_p2 = pnand %p2005_p11, %p2756_p8  ;;  %p2013_p0 = por %p2012_p3, %p2011_p5 }
 0x9a8   : > { %p2007_p6 = pneg %p2006_p2 }
 0x9a9   : > { %v1273_v50 = vpop.f32.mrb[16].mxu0 }
 0x9aa   : > { %1288 = vrot.lane.b32.xlu1 %v1273_v50, %s2108_s14  ;;  %v1643_v51 = vpop.f32.mrb[17].mxu0  ;;  %p2014_p9 = pnand %p2013_p0, %p2007_p6 }
 0x9ab   : > { %v1276_v52 = vpop.f32.mrb[18].mxu0 }
 0x9ac   : > { %v1644_v53 = vpop.f32.mrb[19].mxu0 }
 0x9ef   : > { %v1281_v11 = vpop.permute.xlu1 %1280 }
 0x9f0   : > { %v1291_v55 = vsel %vm722_vm3, %v826_v35, %v1281_v11 }
 0xa14   : > { %v1285_v54 = vpop.permute.xlu0 %1284 }
 0xa15   : > { %v1293_v57 = vsel %vm1292_vm5, %v1291_v55, %v1285_v54 }
 0xa1c   : > { %v1289_v59 = vpop.permute.xlu1 %1288 }
 0xa1d   : > { %v1295_v60 = vsel %vm1294_vm6, %v1293_v57, %v1289_v59 }
 0xa1e   : > { %v1296_v62 = vpack.c.bf16 %v1295_v60, %v1295_v60 }
 0xa20   : > { %1650 = vmatmul.mubr.msk.bf16.vlgmr.msra.gmra.mrb[16].mxu1 %vm538_vm0, %v1296_v62 }
 0xaf3   : > { %v1350_v63 = vpop.f32.mrb[16].mxu1 }
 0xaf4   : > { %v1356_v0 = vmul.f32 4.2426405, %v1350_v63  ;;  %v1651_v1 = vpop.f32.mrb[17].mxu1 }
 0xaf5   : > { %v1353_v2 = vpop.f32.mrb[18].mxu1 }
 0xaf6   : > { %v1357_v4 = vadd.f32 %v1356_v0, %v2469_v3  ;;  %v1652_v5 = vpop.f32.mrb[19].mxu1 }
 0xaf8   : > { %v1358_v6 = vpack.c.bf16 %v1357_v4, %v1357_v4 }
 0xafa   : > { %1360 = vst.msk [vmem:[%s519_s26] sm:$0xf] %vm1359_vm7, %v1358_v6 }
 0xafb   : > { %2017 = shalt.err (!%p2014_p9)
}
 0xafc   : > { %s2018_s17 = scalar_lea.hbm %s2648_s16, 64  ;;  %s2022_s11 = scalar_lea.hbm %s2755_s22, 128 }
 0xafd   : > { %p2019_p13 = scmp.ne.s32.totalorder %s2648_s16, %s2018_s17  ;;  %p2023_p1 = scmp.lt.u32.totalorder %s2648_s16, %s2755_s22 }
 0xafe   : > { %p2024_p10 = scmp.lt.u32.totalorder %s2022_s11, %s2018_s17  ;;  %p2026_p11 = scmp.lt.u32.totalorder %s2018_s17, %s2648_s16 }
 0xaff   : > { %p2020_p4 = pnand %p2019_p13, %p2756_p8 }
 0xb00   : > { %p2025_p12 = por %p2024_p10, %p2023_p1 }
 0xb01   : > { %p2021_p7 = pneg %p2020_p4 }
 0xb02   : > { %p2027_p2 = por %p2026_p11, %p2025_p12 }
 0xb04   : > { %p2028_p6 = pnand %p2027_p2, %p2021_p7 }
 0xb06   : > { %2031 = shalt.err (!%p2028_p6)
}
 0xb07   : > { %1675 = dma.vmem_to_hbm [thread:$0]  (%p2756_p8), %s2650_s29, 64, %s2648_s16, %s1362_s23  }
 0xb08 PF: > { %s2757_s19 = sld [smem:[#allocation20_spill]]  ;;  %s2758_s21 = sld [smem:[#allocation25_spill]] }
 0xb09   : > { %p2760_p3 = scmp.ge.s32.totalorder %s2082_s20, 2 }
 0xb0e   : > { %s1387_s15 = sand.u32 1, %s2757_s19   ;;  %p2759_p5 = scmp.ne.s32.totalorder %s2758_s21, 0 }
 0xb0f   : > { %s1388_s26 = scalar_lea.sflag [#allocation4], %s1387_s15 }
 0xb10   : > { %p1701_p0 = pnand %p2760_p3, %p2759_p5 }
 0xb12   : > { %2065 = dma.done.wait (!%p1701_p0), %s1388_s26, 64  }
 0xb13   : > { %2067 = vsyncadd (!%p1701_p0), %s1388_s26, 4294967232  ;;  %s2761_s20 = sld [smem:[#allocation22_spill]]  ;;  %s2762_s27 = sld [smem:[#allocation21_spill]] }
 0xb14   : > { %s2763_s19 = sld [smem:[#allocation23_spill]]  ;;  %s2764_s17 = smov %s2074_s18 }
 0xb19   : > { %p29_p9 = scmp.ge.s32.totalorder %s2761_s20, 4   ;;  %s2765_s18 = smov %s2762_s27 }
 0xb1b   :  { %31 = sbr.rel (!%p29_p9) target bundleno = 14 (0xe), region = 149 }
 0xb22   :  { %1393 = vsyncpa [#allocation3], 1 }
 0xb23   :  { %1395 = vsyncpa [#allocation3 + $0x1], 1 }
 0xb24   :  { %1396 = vsyncpa [#allocation6], 1 }
 0xb25   :  { %1398 = vsyncpa [#allocation6 + $0x1], 1 }
 0xb26   :  { %1399 = vsyncpa [#allocation9], 1 }
 0xb27   :  { %1400 = vsyncpa [#allocation12], 1 }
 0xb28   :  { %1401 = vsyncpa [#allocation4], 1 }
 0xb29   :  { %1403 = vsyncpa [#allocation4 + $0x1], 1 }

</bundles_post_ra>
